<compile_context>
chip_gen: v5e
topology: v5e:2x2
jax: 0.10.0
libtpu: 0.0.40
codegen_flags: <defaults>
</compile_context>

<pallas_src>
import numpy as np
import jax
import jax.numpy as jnp
from jax.experimental import pallas as pl
from jax.experimental.pallas import tpu as pltpu


def _round_up(x, m):
    return (x + m - 1) // m * m


# --------------------------- fused LSTM-stack kernel ---------------------------

def _make_fused_lstm_kernel(T, Bp, H, num_layers):
    """Fused kernel: num_layers LSTM layers + Softplus + Linear.

    Ref order (inputs, outputs, scratch):
      x_ref                       : (T*Bp, In0)   f32, time-major rows (row = t*Bp + b)
      [w_ih_l, w_hh_l, b_l] * L   : (In_l, 4H) bf16, (H, 4H) bf16, (1, 4H) f32
      w_lin_ref, b_lin_ref        : (H, Op) bf16, (1, Op) f32   (Op = 128-padded)
      out_ref                     : (T*Bp, Op) f32
      gx_scr                      : (T*Bp, 4H) f32  hoisted input-projection slab
      seq_scr                     : (T*Bp, H)  f32  current layer's hidden sequence
    """

    def kernel(*refs):
        x_ref = refs[0]
        lrefs = refs[1:1 + 3 * num_layers]
        w_lin_ref = refs[1 + 3 * num_layers]
        b_lin_ref = refs[2 + 3 * num_layers]
        out_ref = refs[3 + 3 * num_layers]
        gx_scr = refs[4 + 3 * num_layers]
        seq_scr = refs[5 + 3 * num_layers]

        # Short fixed trip-count -> fully unroll for LLO scheduler visibility.
        unroll = True if T <= 32 else 8

        # Per-lane constants for the fused gate activation.  Gate layout is
        # [i | f | g | o] blocks of H lanes; i/f/o use sigmoid(x)=0.5*tanh(x/2)+0.5,
        # g uses plain tanh.  Built ONCE here (JAX does not CSE broadcast_in_dim,
        # so these must not be re-materialized inside the fori_loop).
        lane = jax.lax.broadcasted_iota(jnp.int32, (Bp, 4 * H), 1)
        is_tanh_block = (lane >= 2 * H) & (lane < 3 * H)
        gate_scale = jnp.where(is_tanh_block, 1.0, 0.5).astype(jnp.float32)
        gate_shift = jnp.where(is_tanh_block, 0.0, 0.5).astype(jnp.float32)

        for l in range(num_layers):
            w_ih = lrefs[3 * l]
            w_hh = lrefs[3 * l + 1]
            b = lrefs[3 * l + 2]

            # Hoisted input projection: one MXU-friendly matmul over ALL time
            # steps instead of T tiny matmuls on the serial critical path.
            #
            # ORDERING NOTE: for l > 0 this full-slab READ of seq_scr must stay
            # ordered before the per-step WRITES to seq_scr below (WAR hazard).
            # Ref loads/stores on the same ref are program-ordered in Pallas and
            # the data dependence through gx_scr preserves it today; do not drop
            # gx_scr in a refactor without re-establishing that ordering
            # (e.g. via pltpu.touch).
            inp = x_ref[...] if l == 0 else seq_scr[...]
            gx_scr[...] = (
                jnp.dot(inp.astype(jnp.bfloat16), w_ih[...],
                        preferred_element_type=jnp.float32)
                + b[...]
            )

            def step(t, carry, _w_hh=w_hh):
                h, c = carry
                row = pl.multiple_of(t * Bp, Bp)
                # TODO(synk): for very long sequences consider precision=HIGH on
                # this tiny recurrent dot only (error compounds through h/c).
                gates = gx_scr[pl.ds(row, Bp), :] + jnp.dot(
                    h.astype(jnp.bfloat16), _w_hh[...],
                    preferred_element_type=jnp.float32)
                # Single full-vreg tanh replaces the sigmoid+tanh pair:
                #   i/f/o lanes: 0.5 * tanh(0.5 * x) + 0.5 == sigmoid(x)
                #   g lanes    : 1.0 * tanh(1.0 * x) + 0.0 == tanh(x)
                act = jnp.tanh(gates * gate_scale) * gate_scale + gate_shift
                i_g = act[:, 0 * H:1 * H]
                f_g = act[:, 1 * H:2 * H]
                g_g = act[:, 2 * H:3 * H]
                o_g = act[:, 3 * H:4 * H]
                # TODO(synk): the 32-lane slices above may each cost an XLU lane
                # rotate; at H=32 they hide under the h@w_hh matmul latency --
                # check the bundle dump before restructuring (keep c broadcast
                # across gate blocks) per review.
                c_new = f_g * c + i_g * g_g
                h_new = o_g * jnp.tanh(c_new)
                seq_scr[pl.ds(row, Bp), :] = h_new
                return (h_new, c_new)

            zeros = jnp.zeros((Bp, H), jnp.float32)
            jax.lax.fori_loop(0, T, step, (zeros, zeros), unroll=unroll)

        # Fused epilogue: softplus + lane-dense (128-padded) linear over the
        # whole hidden slab at once; unmasked store, dense HBM writeback.
        sp = jax.nn.softplus(seq_scr[...])
        out_ref[...] = (
            jnp.dot(sp.astype(jnp.bfloat16), w_lin_ref[...],
                    preferred_element_type=jnp.float32)
            + b_lin_ref[...]
        ).astype(out_ref.dtype)

    return kernel


# --------------------------------- wrapper -------------------------------------

@jax.jit
def lstm_rnn_forward(params, x):
    """x: (T, B, input_size) -> (T, B, output_size)."""
    T, B, In = x.shape
    layers = params["layers"]
    num_layers = len(layers)
    H = layers[0]["w_hh_t"].shape[0]
    O = params["linear_w_t"].shape[1]

    # Pad batch to a multiple of 8 (sublane width); padded rows are zeros and
    # are sliced away at the end (rows are independent in an LSTM).
    Bp = _round_up(max(B, 8), 8)
    if Bp != B:
        x = jnp.pad(x, ((0, 0), (0, Bp - B), (0, 0)))
    x2d = x.reshape(T * Bp, In)

    # Lane-dense output: pad the linear layer from O to a multiple of 128 lanes
    # so the epilogue store is an unmasked vst; extra columns are free MXU work
    # and are sliced away outside the kernel.
    Op = _round_up(max(O, 128), 128)
    w_lin = params["linear_w_t"]
    b_lin = params["linear_b"]
    if Op != O:
        w_lin = jnp.pad(w_lin, ((0, 0), (0, Op - O)))
        b_lin = jnp.pad(b_lin, ((0, Op - O),))

    # Weights feed the MXU, which truncates to bf16 per pass at default
    # precision anyway: carry them as bf16 (halves weight DMA bytes / VMEM and
    # the vregs holding w_hh live across the unrolled recurrence).  Biases and
    # all elementwise math stay f32 (v5e has no bf16 VPU/EUP).
    to_bf16 = lambda a: a.astype(jnp.bfloat16)
    args = [x2d]
    for lyr in layers:
        args += [to_bf16(lyr["w_ih_t"]), to_bf16(lyr["w_hh_t"]), lyr["b"]]
    args += [to_bf16(w_lin), b_lin.reshape(1, Op)]

    kernel = _make_fused_lstm_kernel(T, Bp, H, num_layers)
    out2d = pl.pallas_call(
        kernel,
        out_shape=jax.ShapeDtypeStruct((T * Bp, Op), jnp.float32),
        in_specs=[pl.BlockSpec(memory_space=pltpu.MemorySpace.VMEM)] * len(args),
        out_specs=pl.BlockSpec(memory_space=pltpu.MemorySpace.VMEM),
        scratch_shapes=[
            pltpu.VMEM((T * Bp, 4 * H), jnp.float32),   # hoisted gate projections
            pltpu.VMEM((T * Bp, H), jnp.float32),       # per-layer hidden sequence
        ],
        compiler_params=pltpu.CompilerParams(
            # Explicit VMEM budget: slabs + weights + I/O are a few hundred KiB
            # at these shapes; 32 MiB leaves ample headroom and is within the
            # physical VMEM of every generation (v5e/v6e 128 MiB, v7x 64 MiB).
            vmem_limit_bytes=32 * 1024 * 1024,
        ),
        # TODO(synk): for large T/H on v7x (64 MiB physical VMEM), chunk the
        # time axis: grid over T-chunks with BlockSpecs streaming x/out and a
        # chunked gx slab, carrying h/c across chunks in scratch.
        # TODO(synk): when Bp >= 16 on v7x, add a batch-parallel grid axis
        # (dimension_semantics=("parallel",)) so independent sequences run on
        # both TensorCores; with B=2 everything stays on one TC.
    )(*args)

    return out2d.reshape(T, Bp, Op)[:, :B, :O]


# --------------------------------- params --------------------------------------

def init_params(key, input_size, hidden_size, output_size, num_layers):
    """Init mirroring nn.LSTM / nn.Linear shapes (uniform +-1/sqrt(H))."""
    k = 1.0 / np.sqrt(hidden_size)
    params = {"layers": []}
    for l in range(num_layers):
        in_l = input_size if l == 0 else hidden_size
        key, k1, k2, k3, k4 = jax.random.split(key, 5)
        w_ih = jax.random.uniform(k1, (4 * hidden_size, in_l), jnp.float32, -k, k)
        w_hh = jax.random.uniform(k2, (4 * hidden_size, hidden_size), jnp.float32, -k, k)
        b_ih = jax.random.uniform(k3, (4 * hidden_size,), jnp.float32, -k, k)
        b_hh = jax.random.uniform(k4, (4 * hidden_size,), jnp.float32, -k, k)
        params["layers"].append({
            "w_ih_t": w_ih.T,                       # (In, 4H)
            "w_hh_t": w_hh.T,                       # (H, 4H)
            "b": (b_ih + b_hh).reshape(1, -1),      # (1, 4H)
        })
    key, k5, k6 = jax.random.split(key, 3)
    w_lin = jax.random.uniform(k5, (output_size, hidden_size), jnp.float32, -k, k)
    b_lin = jax.random.uniform(k6, (output_size,), jnp.float32, -k, k)
    params["linear_w_t"] = w_lin.T                  # (H, O)
    params["linear_b"] = b_lin                      # (O,)
    return params


# ----------------------------- pure-JAX reference ------------------------------

def _reference_forward(params, x):
    def layer_ref(h_seq, layer):
        H = layer["w_hh_t"].shape[0]

        def step(carry, x_t):
            h, c = carry
            gates = x_t @ layer["w_ih_t"] + h @ layer["w_hh_t"] + layer["b"]
            i = jax.nn.sigmoid(gates[:, 0 * H:1 * H])
            f = jax.nn.sigmoid(gates[:, 1 * H:2 * H])
            g = jnp.tanh(gates[:, 2 * H:3 * H])
            o = jax.nn.sigmoid(gates[:, 3 * H:4 * H])
            c = f * c + i * g
            h = o * jnp.tanh(c)
            return (h, c), h

        B = h_seq.shape[1]
        init = (jnp.zeros((B, H), jnp.float32), jnp.zeros((B, H), jnp.float32))
        _, hs = jax.lax.scan(step, init, h_seq)
        return hs

    h = x
    for layer in params["layers"]:
        h = layer_ref(h, layer)
    h = jax.nn.softplus(h)
    return h @ params["linear_w_t"] + params["linear_b"]


# ------------------------------------ main --------------------------------------

if __name__ == "__main__":
    input_size, hidden_size, output_size, num_layers = 16, 32, 4, 2
    T, B = 8, 2  # seq_len, batch

    key = jax.random.PRNGKey(0)
    key, pkey, xkey = jax.random.split(key, 3)
    params = init_params(pkey, input_size, hidden_size, output_size, num_layers)
    x = jax.random.normal(xkey, (T, B, input_size), jnp.float32)

    out = lstm_rnn_forward(params, x)
    out = jax.block_until_ready(out)
    assert out.shape == (T, B, output_size), out.shape

    ref = _reference_forward(params, x)
    # Tolerance reflects bf16 MXU operands (equivalent to default single-pass
    # MXU precision) compounding through the T=8 recurrence.
    np.testing.assert_allclose(np.asarray(out), np.asarray(ref), rtol=2e-2, atol=2e-2)

    print("KERNEL_OK")
</pallas_src>

<mosaic_0001>
module attributes {stable_mosaic.version = 11 : i64} {
  func.func @kernel(%arg0: memref<64x16xf32, #tpu.memory_space<vmem>>, %arg1: memref<16x128xbf16, #tpu.memory_space<vmem>>, %arg2: memref<32x128xbf16, #tpu.memory_space<vmem>>, %arg3: memref<1x128xf32, #tpu.memory_space<vmem>>, %arg4: memref<32x128xbf16, #tpu.memory_space<vmem>>, %arg5: memref<32x128xbf16, #tpu.memory_space<vmem>>, %arg6: memref<1x128xf32, #tpu.memory_space<vmem>>, %arg7: memref<32x128xbf16, #tpu.memory_space<vmem>>, %arg8: memref<1x128xf32, #tpu.memory_space<vmem>>, %arg9: memref<64x128xf32, #tpu.memory_space<vmem>>, %arg10: memref<64x128xf32, #tpu.memory_space<vmem>>, %arg11: memref<64x32xf32, #tpu.memory_space<vmem>>) attributes {dimension_semantics = [], scalar_prefetch = 0 : i64, scratch_operands = 2 : i64, tpu.core_type = #tpu.core_type<tc>} {
    %0 = tpu.iota {dimensions = array<i32: 1>} : vector<8x128xi32>
    %c64_i32 = arith.constant 64 : i32
    %1 = vector.broadcast %c64_i32 : i32 to vector<8x128xi32>
    %2 = arith.cmpi sge, %0, %1 : vector<8x128xi32>
    %c96_i32 = arith.constant 96 : i32
    %3 = vector.broadcast %c96_i32 : i32 to vector<8x128xi32>
    %4 = arith.cmpi slt, %0, %3 : vector<8x128xi32>
    %5 = arith.andi %2, %4 : vector<8x128xi1>
    %cst = arith.constant 1.000000e+00 : f32
    %cst_0 = arith.constant 5.000000e-01 : f32
    %6 = vector.broadcast %cst : f32 to vector<8x128xf32>
    %7 = vector.broadcast %cst_0 : f32 to vector<8x128xf32>
    %8 = arith.select %5, %6, %7 : vector<8x128xi1>, vector<8x128xf32>
    %cst_1 = arith.constant 0.000000e+00 : f32
    %cst_2 = arith.constant 5.000000e-01 : f32
    %9 = vector.broadcast %cst_1 : f32 to vector<8x128xf32>
    %10 = vector.broadcast %cst_2 : f32 to vector<8x128xf32>
    %11 = arith.select %5, %9, %10 : vector<8x128xi1>, vector<8x128xf32>
    %c0 = arith.constant 0 : index
    %c0_3 = arith.constant 0 : index
    %12 = vector.load %arg0[%c0, %c0_3] : memref<64x16xf32, #tpu.memory_space<vmem>>, vector<64x16xf32>
    %13 = arith.truncf %12 : vector<64x16xf32> to vector<64x16xbf16>
    %c0_4 = arith.constant 0 : index
    %c0_5 = arith.constant 0 : index
    %14 = vector.load %arg1[%c0_4, %c0_5] : memref<16x128xbf16, #tpu.memory_space<vmem>>, vector<16x128xbf16>
    %cst_6 = arith.constant dense<0.000000e+00> : vector<64x128xf32>
    %15 = tpu.matmul %13, %14, %cst_6 {dimension_numbers = #tpu.dot_dimension_numbers<[1], [0], [0], [1], [0, 0, 1, 1], [], []>} : vector<64x16xbf16>, vector<16x128xbf16>, vector<64x128xf32> -> vector<64x128xf32>
    %c0_7 = arith.constant 0 : index
    %c0_8 = arith.constant 0 : index
    %16 = vector.load %arg3[%c0_7, %c0_8] : memref<1x128xf32, #tpu.memory_space<vmem>>, vector<1x128xf32>
    %17 = vector.broadcast %16 : vector<1x128xf32> to vector<64x128xf32>
    %18 = arith.addf %15, %17 : vector<64x128xf32>
    %c0_9 = arith.constant 0 : index
    %c0_10 = arith.constant 0 : index
    %19 = vector.load %arg10[%c0_9, %c0_10] : memref<64x128xf32, #tpu.memory_space<vmem>>, vector<64x128xf32>
    tpu.vector_store %arg10[%c0_9, %c0_10], %18 {strides = array<i32>} : memref<64x128xf32, #tpu.memory_space<vmem>>, vector<64x128xf32>,
    %cst_11 = arith.constant 0.000000e+00 : f32
    %20 = vector.broadcast %cst_11 : f32 to vector<8x32xf32>
    %c0_i32 = arith.constant 0 : i32
    %c8_i32 = arith.constant 8 : i32
    %21 = arith.muli %c0_i32, %c8_i32 : i32
    %22 = tpu.assume_multiple %21, 8 : i32
    %23 = arith.index_cast %22 : i32 to index
    %c0_12 = arith.constant 0 : index
    %24 = vector.load %arg10[%23, %c0_12] : memref<64x128xf32, #tpu.memory_space<vmem>>, vector<8x128xf32>
    %25 = arith.truncf %20 : vector<8x32xf32> to vector<8x32xbf16>
    %c0_13 = arith.constant 0 : index
    %c0_14 = arith.constant 0 : index
    %26 = vector.load %arg2[%c0_13, %c0_14] : memref<32x128xbf16, #tpu.memory_space<vmem>>, vector<32x128xbf16>
    %cst_15 = arith.constant dense<0.000000e+00> : vector<8x128xf32>
    %27 = tpu.matmul %25, %26, %cst_15 {dimension_numbers = #tpu.dot_dimension_numbers<[1], [0], [0], [1], [0, 0, 1, 1], [], []>} : vector<8x32xbf16>, vector<32x128xbf16>, vector<8x128xf32> -> vector<8x128xf32>
    %28 = arith.addf %24, %27 : vector<8x128xf32>
    %29 = arith.mulf %28, %8 : vector<8x128xf32>
    %30 = math.tanh %29 : vector<8x128xf32>
    %31 = arith.mulf %30, %8 : vector<8x128xf32>
    %32 = arith.addf %31, %11 : vector<8x128xf32>
    %33 = vector.extract_strided_slice %32 {offsets = [0, 0], sizes = [8, 32], strides = [1, 1]} : vector<8x128xf32> to vector<8x32xf32>
    %34 = vector.extract_strided_slice %32 {offsets = [0, 32], sizes = [8, 32], strides = [1, 1]} : vector<8x128xf32> to vector<8x32xf32>
    %35 = vector.extract_strided_slice %32 {offsets = [0, 64], sizes = [8, 32], strides = [1, 1]} : vector<8x128xf32> to vector<8x32xf32>
    %36 = vector.extract_strided_slice %32 {offsets = [0, 96], sizes = [8, 32], strides = [1, 1]} : vector<8x128xf32> to vector<8x32xf32>
    %37 = arith.mulf %34, %20 : vector<8x32xf32>
    %38 = arith.mulf %33, %35 : vector<8x32xf32>
    %39 = arith.addf %37, %38 : vector<8x32xf32>
    %40 = math.tanh %39 : vector<8x32xf32>
    %41 = arith.mulf %36, %40 : vector<8x32xf32>
    %42 = arith.index_cast %22 : i32 to index
    %c0_16 = arith.constant 0 : index
    %43 = vector.load %arg11[%42, %c0_16] : memref<64x32xf32, #tpu.memory_space<vmem>>, vector<8x32xf32>
    tpu.vector_store %arg11[%42, %c0_16], %41 {strides = array<i32>} : memref<64x32xf32, #tpu.memory_space<vmem>>, vector<8x32xf32>,
    %c1_i32 = arith.constant 1 : i32
    %c8_i32_17 = arith.constant 8 : i32
    %44 = arith.muli %c1_i32, %c8_i32_17 : i32
    %45 = tpu.assume_multiple %44, 8 : i32
    %46 = arith.index_cast %45 : i32 to index
    %c0_18 = arith.constant 0 : index
    %47 = vector.load %arg10[%46, %c0_18] : memref<64x128xf32, #tpu.memory_space<vmem>>, vector<8x128xf32>
    %48 = arith.truncf %41 : vector<8x32xf32> to vector<8x32xbf16>
    %c0_19 = arith.constant 0 : index
    %c0_20 = arith.constant 0 : index
    %49 = vector.load %arg2[%c0_19, %c0_20] : memref<32x128xbf16, #tpu.memory_space<vmem>>, vector<32x128xbf16>
    %cst_21 = arith.constant dense<0.000000e+00> : vector<8x128xf32>
    %50 = tpu.matmul %48, %49, %cst_21 {dimension_numbers = #tpu.dot_dimension_numbers<[1], [0], [0], [1], [0, 0, 1, 1], [], []>} : vector<8x32xbf16>, vector<32x128xbf16>, vector<8x128xf32> -> vector<8x128xf32>
    %51 = arith.addf %47, %50 : vector<8x128xf32>
    %52 = arith.mulf %51, %8 : vector<8x128xf32>
    %53 = math.tanh %52 : vector<8x128xf32>
    %54 = arith.mulf %53, %8 : vector<8x128xf32>
    %55 = arith.addf %54, %11 : vector<8x128xf32>
    %56 = vector.extract_strided_slice %55 {offsets = [0, 0], sizes = [8, 32], strides = [1, 1]} : vector<8x128xf32> to vector<8x32xf32>
    %57 = vector.extract_strided_slice %55 {offsets = [0, 32], sizes = [8, 32], strides = [1, 1]} : vector<8x128xf32> to vector<8x32xf32>
    %58 = vector.extract_strided_slice %55 {offsets = [0, 64], sizes = [8, 32], strides = [1, 1]} : vector<8x128xf32> to vector<8x32xf32>
    %59 = vector.extract_strided_slice %55 {offsets = [0, 96], sizes = [8, 32], strides = [1, 1]} : vector<8x128xf32> to vector<8x32xf32>
    %60 = arith.mulf %57, %39 : vector<8x32xf32>
    %61 = arith.mulf %56, %58 : vector<8x32xf32>
    %62 = arith.addf %60, %61 : vector<8x32xf32>
    %63 = math.tanh %62 : vector<8x32xf32>
    %64 = arith.mulf %59, %63 : vector<8x32xf32>
    %65 = arith.index_cast %45 : i32 to index
    %c0_22 = arith.constant 0 : index
    %66 = vector.load %arg11[%65, %c0_22] : memref<64x32xf32, #tpu.memory_space<vmem>>, vector<8x32xf32>
    tpu.vector_store %arg11[%65, %c0_22], %64 {strides = array<i32>} : memref<64x32xf32, #tpu.memory_space<vmem>>, vector<8x32xf32>,
    %c2_i32 = arith.constant 2 : i32
    %c8_i32_23 = arith.constant 8 : i32
    %67 = arith.muli %c2_i32, %c8_i32_23 : i32
    %68 = tpu.assume_multiple %67, 8 : i32
    %69 = arith.index_cast %68 : i32 to index
    %c0_24 = arith.constant 0 : index
    %70 = vector.load %arg10[%69, %c0_24] : memref<64x128xf32, #tpu.memory_space<vmem>>, vector<8x128xf32>
    %71 = arith.truncf %64 : vector<8x32xf32> to vector<8x32xbf16>
    %c0_25 = arith.constant 0 : index
    %c0_26 = arith.constant 0 : index
    %72 = vector.load %arg2[%c0_25, %c0_26] : memref<32x128xbf16, #tpu.memory_space<vmem>>, vector<32x128xbf16>
    %cst_27 = arith.constant dense<0.000000e+00> : vector<8x128xf32>
    %73 = tpu.matmul %71, %72, %cst_27 {dimension_numbers = #tpu.dot_dimension_numbers<[1], [0], [0], [1], [0, 0, 1, 1], [], []>} : vector<8x32xbf16>, vector<32x128xbf16>, vector<8x128xf32> -> vector<8x128xf32>
    %74 = arith.addf %70, %73 : vector<8x128xf32>
    %75 = arith.mulf %74, %8 : vector<8x128xf32>
    %76 = math.tanh %75 : vector<8x128xf32>
    %77 = arith.mulf %76, %8 : vector<8x128xf32>
    %78 = arith.addf %77, %11 : vector<8x128xf32>
    %79 = vector.extract_strided_slice %78 {offsets = [0, 0], sizes = [8, 32], strides = [1, 1]} : vector<8x128xf32> to vector<8x32xf32>
    %80 = vector.extract_strided_slice %78 {offsets = [0, 32], sizes = [8, 32], strides = [1, 1]} : vector<8x128xf32> to vector<8x32xf32>
    %81 = vector.extract_strided_slice %78 {offsets = [0, 64], sizes = [8, 32], strides = [1, 1]} : vector<8x128xf32> to vector<8x32xf32>
    %82 = vector.extract_strided_slice %78 {offsets = [0, 96], sizes = [8, 32], strides = [1, 1]} : vector<8x128xf32> to vector<8x32xf32>
    %83 = arith.mulf %80, %62 : vector<8x32xf32>
    %84 = arith.mulf %79, %81 : vector<8x32xf32>
    %85 = arith.addf %83, %84 : vector<8x32xf32>
    %86 = math.tanh %85 : vector<8x32xf32>
    %87 = arith.mulf %82, %86 : vector<8x32xf32>
    %88 = arith.index_cast %68 : i32 to index
    %c0_28 = arith.constant 0 : index
    %89 = vector.load %arg11[%88, %c0_28] : memref<64x32xf32, #tpu.memory_space<vmem>>, vector<8x32xf32>
    tpu.vector_store %arg11[%88, %c0_28], %87 {strides = array<i32>} : memref<64x32xf32, #tpu.memory_space<vmem>>, vector<8x32xf32>,
    %c3_i32 = arith.constant 3 : i32
    %c8_i32_29 = arith.constant 8 : i32
    %90 = arith.muli %c3_i32, %c8_i32_29 : i32
    %91 = tpu.assume_multiple %90, 8 : i32
    %92 = arith.index_cast %91 : i32 to index
    %c0_30 = arith.constant 0 : index
    %93 = vector.load %arg10[%92, %c0_30] : memref<64x128xf32, #tpu.memory_space<vmem>>, vector<8x128xf32>
    %94 = arith.truncf %87 : vector<8x32xf32> to vector<8x32xbf16>
    %c0_31 = arith.constant 0 : index
    %c0_32 = arith.constant 0 : index
    %95 = vector.load %arg2[%c0_31, %c0_32] : memref<32x128xbf16, #tpu.memory_space<vmem>>, vector<32x128xbf16>
    %cst_33 = arith.constant dense<0.000000e+00> : vector<8x128xf32>
    %96 = tpu.matmul %94, %95, %cst_33 {dimension_numbers = #tpu.dot_dimension_numbers<[1], [0], [0], [1], [0, 0, 1, 1], [], []>} : vector<8x32xbf16>, vector<32x128xbf16>, vector<8x128xf32> -> vector<8x128xf32>
    %97 = arith.addf %93, %96 : vector<8x128xf32>
    %98 = arith.mulf %97, %8 : vector<8x128xf32>
    %99 = math.tanh %98 : vector<8x128xf32>
    %100 = arith.mulf %99, %8 : vector<8x128xf32>
    %101 = arith.addf %100, %11 : vector<8x128xf32>
    %102 = vector.extract_strided_slice %101 {offsets = [0, 0], sizes = [8, 32], strides = [1, 1]} : vector<8x128xf32> to vector<8x32xf32>
    %103 = vector.extract_strided_slice %101 {offsets = [0, 32], sizes = [8, 32], strides = [1, 1]} : vector<8x128xf32> to vector<8x32xf32>
    %104 = vector.extract_strided_slice %101 {offsets = [0, 64], sizes = [8, 32], strides = [1, 1]} : vector<8x128xf32> to vector<8x32xf32>
    %105 = vector.extract_strided_slice %101 {offsets = [0, 96], sizes = [8, 32], strides = [1, 1]} : vector<8x128xf32> to vector<8x32xf32>
    %106 = arith.mulf %103, %85 : vector<8x32xf32>
    %107 = arith.mulf %102, %104 : vector<8x32xf32>
    %108 = arith.addf %106, %107 : vector<8x32xf32>
    %109 = math.tanh %108 : vector<8x32xf32>
    %110 = arith.mulf %105, %109 : vector<8x32xf32>
    %111 = arith.index_cast %91 : i32 to index
    %c0_34 = arith.constant 0 : index
    %112 = vector.load %arg11[%111, %c0_34] : memref<64x32xf32, #tpu.memory_space<vmem>>, vector<8x32xf32>
    tpu.vector_store %arg11[%111, %c0_34], %110 {strides = array<i32>} : memref<64x32xf32, #tpu.memory_space<vmem>>, vector<8x32xf32>,
    %c4_i32 = arith.constant 4 : i32
    %c8_i32_35 = arith.constant 8 : i32
    %113 = arith.muli %c4_i32, %c8_i32_35 : i32
    %114 = tpu.assume_multiple %113, 8 : i32
    %115 = arith.index_cast %114 : i32 to index
    %c0_36 = arith.constant 0 : index
    %116 = vector.load %arg10[%115, %c0_36] : memref<64x128xf32, #tpu.memory_space<vmem>>, vector<8x128xf32>
    %117 = arith.truncf %110 : vector<8x32xf32> to vector<8x32xbf16>
    %c0_37 = arith.constant 0 : index
    %c0_38 = arith.constant 0 : index
    %118 = vector.load %arg2[%c0_37, %c0_38] : memref<32x128xbf16, #tpu.memory_space<vmem>>, vector<32x128xbf16>
    %cst_39 = arith.constant dense<0.000000e+00> : vector<8x128xf32>
    %119 = tpu.matmul %117, %118, %cst_39 {dimension_numbers = #tpu.dot_dimension_numbers<[1], [0], [0], [1], [0, 0, 1, 1], [], []>} : vector<8x32xbf16>, vector<32x128xbf16>, vector<8x128xf32> -> vector<8x128xf32>
    %120 = arith.addf %116, %119 : vector<8x128xf32>
    %121 = arith.mulf %120, %8 : vector<8x128xf32>
    %122 = math.tanh %121 : vector<8x128xf32>
    %123 = arith.mulf %122, %8 : vector<8x128xf32>
    %124 = arith.addf %123, %11 : vector<8x128xf32>
    %125 = vector.extract_strided_slice %124 {offsets = [0, 0], sizes = [8, 32], strides = [1, 1]} : vector<8x128xf32> to vector<8x32xf32>
    %126 = vector.extract_strided_slice %124 {offsets = [0, 32], sizes = [8, 32], strides = [1, 1]} : vector<8x128xf32> to vector<8x32xf32>
    %127 = vector.extract_strided_slice %124 {offsets = [0, 64], sizes = [8, 32], strides = [1, 1]} : vector<8x128xf32> to vector<8x32xf32>
    %128 = vector.extract_strided_slice %124 {offsets = [0, 96], sizes = [8, 32], strides = [1, 1]} : vector<8x128xf32> to vector<8x32xf32>
    %129 = arith.mulf %126, %108 : vector<8x32xf32>
    %130 = arith.mulf %125, %127 : vector<8x32xf32>
    %131 = arith.addf %129, %130 : vector<8x32xf32>
    %132 = math.tanh %131 : vector<8x32xf32>
    %133 = arith.mulf %128, %132 : vector<8x32xf32>
    %134 = arith.index_cast %114 : i32 to index
    %c0_40 = arith.constant 0 : index
    %135 = vector.load %arg11[%134, %c0_40] : memref<64x32xf32, #tpu.memory_space<vmem>>, vector<8x32xf32>
    tpu.vector_store %arg11[%134, %c0_40], %133 {strides = array<i32>} : memref<64x32xf32, #tpu.memory_space<vmem>>, vector<8x32xf32>,
    %c5_i32 = arith.constant 5 : i32
    %c8_i32_41 = arith.constant 8 : i32
    %136 = arith.muli %c5_i32, %c8_i32_41 : i32
    %137 = tpu.assume_multiple %136, 8 : i32
    %138 = arith.index_cast %137 : i32 to index
    %c0_42 = arith.constant 0 : index
    %139 = vector.load %arg10[%138, %c0_42] : memref<64x128xf32, #tpu.memory_space<vmem>>, vector<8x128xf32>
    %140 = arith.truncf %133 : vector<8x32xf32> to vector<8x32xbf16>
    %c0_43 = arith.constant 0 : index
    %c0_44 = arith.constant 0 : index
    %141 = vector.load %arg2[%c0_43, %c0_44] : memref<32x128xbf16, #tpu.memory_space<vmem>>, vector<32x128xbf16>
    %cst_45 = arith.constant dense<0.000000e+00> : vector<8x128xf32>
    %142 = tpu.matmul %140, %141, %cst_45 {dimension_numbers = #tpu.dot_dimension_numbers<[1], [0], [0], [1], [0, 0, 1, 1], [], []>} : vector<8x32xbf16>, vector<32x128xbf16>, vector<8x128xf32> -> vector<8x128xf32>
    %143 = arith.addf %139, %142 : vector<8x128xf32>
    %144 = arith.mulf %143, %8 : vector<8x128xf32>
    %145 = math.tanh %144 : vector<8x128xf32>
    %146 = arith.mulf %145, %8 : vector<8x128xf32>
    %147 = arith.addf %146, %11 : vector<8x128xf32>
    %148 = vector.extract_strided_slice %147 {offsets = [0, 0], sizes = [8, 32], strides = [1, 1]} : vector<8x128xf32> to vector<8x32xf32>
    %149 = vector.extract_strided_slice %147 {offsets = [0, 32], sizes = [8, 32], strides = [1, 1]} : vector<8x128xf32> to vector<8x32xf32>
    %150 = vector.extract_strided_slice %147 {offsets = [0, 64], sizes = [8, 32], strides = [1, 1]} : vector<8x128xf32> to vector<8x32xf32>
    %151 = vector.extract_strided_slice %147 {offsets = [0, 96], sizes = [8, 32], strides = [1, 1]} : vector<8x128xf32> to vector<8x32xf32>
    %152 = arith.mulf %149, %131 : vector<8x32xf32>
    %153 = arith.mulf %148, %150 : vector<8x32xf32>
    %154 = arith.addf %152, %153 : vector<8x32xf32>
    %155 = math.tanh %154 : vector<8x32xf32>
    %156 = arith.mulf %151, %155 : vector<8x32xf32>
    %157 = arith.index_cast %137 : i32 to index
    %c0_46 = arith.constant 0 : index
    %158 = vector.load %arg11[%157, %c0_46] : memref<64x32xf32, #tpu.memory_space<vmem>>, vector<8x32xf32>
    tpu.vector_store %arg11[%157, %c0_46], %156 {strides = array<i32>} : memref<64x32xf32, #tpu.memory_space<vmem>>, vector<8x32xf32>,
    %c6_i32 = arith.constant 6 : i32
    %c8_i32_47 = arith.constant 8 : i32
    %159 = arith.muli %c6_i32, %c8_i32_47 : i32
    %160 = tpu.assume_multiple %159, 8 : i32
    %161 = arith.index_cast %160 : i32 to index
    %c0_48 = arith.constant 0 : index
    %162 = vector.load %arg10[%161, %c0_48] : memref<64x128xf32, #tpu.memory_space<vmem>>, vector<8x128xf32>
    %163 = arith.truncf %156 : vector<8x32xf32> to vector<8x32xbf16>
    %c0_49 = arith.constant 0 : index
    %c0_50 = arith.constant 0 : index
    %164 = vector.load %arg2[%c0_49, %c0_50] : memref<32x128xbf16, #tpu.memory_space<vmem>>, vector<32x128xbf16>
    %cst_51 = arith.constant dense<0.000000e+00> : vector<8x128xf32>
    %165 = tpu.matmul %163, %164, %cst_51 {dimension_numbers = #tpu.dot_dimension_numbers<[1], [0], [0], [1], [0, 0, 1, 1], [], []>} : vector<8x32xbf16>, vector<32x128xbf16>, vector<8x128xf32> -> vector<8x128xf32>
    %166 = arith.addf %162, %165 : vector<8x128xf32>
    %167 = arith.mulf %166, %8 : vector<8x128xf32>
    %168 = math.tanh %167 : vector<8x128xf32>
    %169 = arith.mulf %168, %8 : vector<8x128xf32>
    %170 = arith.addf %169, %11 : vector<8x128xf32>
    %171 = vector.extract_strided_slice %170 {offsets = [0, 0], sizes = [8, 32], strides = [1, 1]} : vector<8x128xf32> to vector<8x32xf32>
    %172 = vector.extract_strided_slice %170 {offsets = [0, 32], sizes = [8, 32], strides = [1, 1]} : vector<8x128xf32> to vector<8x32xf32>
    %173 = vector.extract_strided_slice %170 {offsets = [0, 64], sizes = [8, 32], strides = [1, 1]} : vector<8x128xf32> to vector<8x32xf32>
    %174 = vector.extract_strided_slice %170 {offsets = [0, 96], sizes = [8, 32], strides = [1, 1]} : vector<8x128xf32> to vector<8x32xf32>
    %175 = arith.mulf %172, %154 : vector<8x32xf32>
    %176 = arith.mulf %171, %173 : vector<8x32xf32>
    %177 = arith.addf %175, %176 : vector<8x32xf32>
    %178 = math.tanh %177 : vector<8x32xf32>
    %179 = arith.mulf %174, %178 : vector<8x32xf32>
    %180 = arith.index_cast %160 : i32 to index
    %c0_52 = arith.constant 0 : index
    %181 = vector.load %arg11[%180, %c0_52] : memref<64x32xf32, #tpu.memory_space<vmem>>, vector<8x32xf32>
    tpu.vector_store %arg11[%180, %c0_52], %179 {strides = array<i32>} : memref<64x32xf32, #tpu.memory_space<vmem>>, vector<8x32xf32>,
    %c7_i32 = arith.constant 7 : i32
    %c8_i32_53 = arith.constant 8 : i32
    %182 = arith.muli %c7_i32, %c8_i32_53 : i32
    %183 = tpu.assume_multiple %182, 8 : i32
    %184 = arith.index_cast %183 : i32 to index
    %c0_54 = arith.constant 0 : index
    %185 = vector.load %arg10[%184, %c0_54] : memref<64x128xf32, #tpu.memory_space<vmem>>, vector<8x128xf32>
    %186 = arith.truncf %179 : vector<8x32xf32> to vector<8x32xbf16>
    %c0_55 = arith.constant 0 : index
    %c0_56 = arith.constant 0 : index
    %187 = vector.load %arg2[%c0_55, %c0_56] : memref<32x128xbf16, #tpu.memory_space<vmem>>, vector<32x128xbf16>
    %cst_57 = arith.constant dense<0.000000e+00> : vector<8x128xf32>
    %188 = tpu.matmul %186, %187, %cst_57 {dimension_numbers = #tpu.dot_dimension_numbers<[1], [0], [0], [1], [0, 0, 1, 1], [], []>} : vector<8x32xbf16>, vector<32x128xbf16>, vector<8x128xf32> -> vector<8x128xf32>
    %189 = arith.addf %185, %188 : vector<8x128xf32>
    %190 = arith.mulf %189, %8 : vector<8x128xf32>
    %191 = math.tanh %190 : vector<8x128xf32>
    %192 = arith.mulf %191, %8 : vector<8x128xf32>
    %193 = arith.addf %192, %11 : vector<8x128xf32>
    %194 = vector.extract_strided_slice %193 {offsets = [0, 0], sizes = [8, 32], strides = [1, 1]} : vector<8x128xf32> to vector<8x32xf32>
    %195 = vector.extract_strided_slice %193 {offsets = [0, 32], sizes = [8, 32], strides = [1, 1]} : vector<8x128xf32> to vector<8x32xf32>
    %196 = vector.extract_strided_slice %193 {offsets = [0, 64], sizes = [8, 32], strides = [1, 1]} : vector<8x128xf32> to vector<8x32xf32>
    %197 = vector.extract_strided_slice %193 {offsets = [0, 96], sizes = [8, 32], strides = [1, 1]} : vector<8x128xf32> to vector<8x32xf32>
    %198 = arith.mulf %195, %177 : vector<8x32xf32>
    %199 = arith.mulf %194, %196 : vector<8x32xf32>
    %200 = arith.addf %198, %199 : vector<8x32xf32>
    %201 = math.tanh %200 : vector<8x32xf32>
    %202 = arith.mulf %197, %201 : vector<8x32xf32>
    %203 = arith.index_cast %183 : i32 to index
    %c0_58 = arith.constant 0 : index
    %204 = vector.load %arg11[%203, %c0_58] : memref<64x32xf32, #tpu.memory_space<vmem>>, vector<8x32xf32>
    tpu.vector_store %arg11[%203, %c0_58], %202 {strides = array<i32>} : memref<64x32xf32, #tpu.memory_space<vmem>>, vector<8x32xf32>,
    %c8_i32_59 = arith.constant 8 : i32
    %c0_60 = arith.constant 0 : index
    %c0_61 = arith.constant 0 : index
    %205 = vector.load %arg11[%c0_60, %c0_61] : memref<64x32xf32, #tpu.memory_space<vmem>>, vector<64x32xf32>
    %206 = arith.truncf %205 : vector<64x32xf32> to vector<64x32xbf16>
    %c0_62 = arith.constant 0 : index
    %c0_63 = arith.constant 0 : index
    %207 = vector.load %arg4[%c0_62, %c0_63] : memref<32x128xbf16, #tpu.memory_space<vmem>>, vector<32x128xbf16>
    %cst_64 = arith.constant dense<0.000000e+00> : vector<64x128xf32>
    %208 = tpu.matmul %206, %207, %cst_64 {dimension_numbers = #tpu.dot_dimension_numbers<[1], [0], [0], [1], [0, 0, 1, 1], [], []>} : vector<64x32xbf16>, vector<32x128xbf16>, vector<64x128xf32> -> vector<64x128xf32>
    %c0_65 = arith.constant 0 : index
    %c0_66 = arith.constant 0 : index
    %209 = vector.load %arg6[%c0_65, %c0_66] : memref<1x128xf32, #tpu.memory_space<vmem>>, vector<1x128xf32>
    %210 = vector.broadcast %209 : vector<1x128xf32> to vector<64x128xf32>
    %211 = arith.addf %208, %210 : vector<64x128xf32>
    %c0_67 = arith.constant 0 : index
    %c0_68 = arith.constant 0 : index
    %212 = vector.load %arg10[%c0_67, %c0_68] : memref<64x128xf32, #tpu.memory_space<vmem>>, vector<64x128xf32>
    tpu.vector_store %arg10[%c0_67, %c0_68], %211 {strides = array<i32>} : memref<64x128xf32, #tpu.memory_space<vmem>>, vector<64x128xf32>,
    %cst_69 = arith.constant 0.000000e+00 : f32
    %213 = vector.broadcast %cst_69 : f32 to vector<8x32xf32>
    %c0_i32_70 = arith.constant 0 : i32
    %c8_i32_71 = arith.constant 8 : i32
    %214 = arith.muli %c0_i32_70, %c8_i32_71 : i32
    %215 = tpu.assume_multiple %214, 8 : i32
    %216 = arith.index_cast %215 : i32 to index
    %c0_72 = arith.constant 0 : index
    %217 = vector.load %arg10[%216, %c0_72] : memref<64x128xf32, #tpu.memory_space<vmem>>, vector<8x128xf32>
    %218 = arith.truncf %213 : vector<8x32xf32> to vector<8x32xbf16>
    %c0_73 = arith.constant 0 : index
    %c0_74 = arith.constant 0 : index
    %219 = vector.load %arg5[%c0_73, %c0_74] : memref<32x128xbf16, #tpu.memory_space<vmem>>, vector<32x128xbf16>
    %cst_75 = arith.constant dense<0.000000e+00> : vector<8x128xf32>
    %220 = tpu.matmul %218, %219, %cst_75 {dimension_numbers = #tpu.dot_dimension_numbers<[1], [0], [0], [1], [0, 0, 1, 1], [], []>} : vector<8x32xbf16>, vector<32x128xbf16>, vector<8x128xf32> -> vector<8x128xf32>
    %221 = arith.addf %217, %220 : vector<8x128xf32>
    %222 = arith.mulf %221, %8 : vector<8x128xf32>
    %223 = math.tanh %222 : vector<8x128xf32>
    %224 = arith.mulf %223, %8 : vector<8x128xf32>
    %225 = arith.addf %224, %11 : vector<8x128xf32>
    %226 = vector.extract_strided_slice %225 {offsets = [0, 0], sizes = [8, 32], strides = [1, 1]} : vector<8x128xf32> to vector<8x32xf32>
    %227 = vector.extract_strided_slice %225 {offsets = [0, 32], sizes = [8, 32], strides = [1, 1]} : vector<8x128xf32> to vector<8x32xf32>
    %228 = vector.extract_strided_slice %225 {offsets = [0, 64], sizes = [8, 32], strides = [1, 1]} : vector<8x128xf32> to vector<8x32xf32>
    %229 = vector.extract_strided_slice %225 {offsets = [0, 96], sizes = [8, 32], strides = [1, 1]} : vector<8x128xf32> to vector<8x32xf32>
    %230 = arith.mulf %227, %213 : vector<8x32xf32>
    %231 = arith.mulf %226, %228 : vector<8x32xf32>
    %232 = arith.addf %230, %231 : vector<8x32xf32>
    %233 = math.tanh %232 : vector<8x32xf32>
    %234 = arith.mulf %229, %233 : vector<8x32xf32>
    %235 = arith.index_cast %215 : i32 to index
    %c0_76 = arith.constant 0 : index
    %236 = vector.load %arg11[%235, %c0_76] : memref<64x32xf32, #tpu.memory_space<vmem>>, vector<8x32xf32>
    tpu.vector_store %arg11[%235, %c0_76], %234 {strides = array<i32>} : memref<64x32xf32, #tpu.memory_space<vmem>>, vector<8x32xf32>,
    %c1_i32_77 = arith.constant 1 : i32
    %c8_i32_78 = arith.constant 8 : i32
    %237 = arith.muli %c1_i32_77, %c8_i32_78 : i32
    %238 = tpu.assume_multiple %237, 8 : i32
    %239 = arith.index_cast %238 : i32 to index
    %c0_79 = arith.constant 0 : index
    %240 = vector.load %arg10[%239, %c0_79] : memref<64x128xf32, #tpu.memory_space<vmem>>, vector<8x128xf32>
    %241 = arith.truncf %234 : vector<8x32xf32> to vector<8x32xbf16>
    %c0_80 = arith.constant 0 : index
    %c0_81 = arith.constant 0 : index
    %242 = vector.load %arg5[%c0_80, %c0_81] : memref<32x128xbf16, #tpu.memory_space<vmem>>, vector<32x128xbf16>
    %cst_82 = arith.constant dense<0.000000e+00> : vector<8x128xf32>
    %243 = tpu.matmul %241, %242, %cst_82 {dimension_numbers = #tpu.dot_dimension_numbers<[1], [0], [0], [1], [0, 0, 1, 1], [], []>} : vector<8x32xbf16>, vector<32x128xbf16>, vector<8x128xf32> -> vector<8x128xf32>
    %244 = arith.addf %240, %243 : vector<8x128xf32>
    %245 = arith.mulf %244, %8 : vector<8x128xf32>
    %246 = math.tanh %245 : vector<8x128xf32>
    %247 = arith.mulf %246, %8 : vector<8x128xf32>
    %248 = arith.addf %247, %11 : vector<8x128xf32>
    %249 = vector.extract_strided_slice %248 {offsets = [0, 0], sizes = [8, 32], strides = [1, 1]} : vector<8x128xf32> to vector<8x32xf32>
    %250 = vector.extract_strided_slice %248 {offsets = [0, 32], sizes = [8, 32], strides = [1, 1]} : vector<8x128xf32> to vector<8x32xf32>
    %251 = vector.extract_strided_slice %248 {offsets = [0, 64], sizes = [8, 32], strides = [1, 1]} : vector<8x128xf32> to vector<8x32xf32>
    %252 = vector.extract_strided_slice %248 {offsets = [0, 96], sizes = [8, 32], strides = [1, 1]} : vector<8x128xf32> to vector<8x32xf32>
    %253 = arith.mulf %250, %232 : vector<8x32xf32>
    %254 = arith.mulf %249, %251 : vector<8x32xf32>
    %255 = arith.addf %253, %254 : vector<8x32xf32>
    %256 = math.tanh %255 : vector<8x32xf32>
    %257 = arith.mulf %252, %256 : vector<8x32xf32>
    %258 = arith.index_cast %238 : i32 to index
    %c0_83 = arith.constant 0 : index
    %259 = vector.load %arg11[%258, %c0_83] : memref<64x32xf32, #tpu.memory_space<vmem>>, vector<8x32xf32>
    tpu.vector_store %arg11[%258, %c0_83], %257 {strides = array<i32>} : memref<64x32xf32, #tpu.memory_space<vmem>>, vector<8x32xf32>,
    %c2_i32_84 = arith.constant 2 : i32
    %c8_i32_85 = arith.constant 8 : i32
    %260 = arith.muli %c2_i32_84, %c8_i32_85 : i32
    %261 = tpu.assume_multiple %260, 8 : i32
    %262 = arith.index_cast %261 : i32 to index
    %c0_86 = arith.constant 0 : index
    %263 = vector.load %arg10[%262, %c0_86] : memref<64x128xf32, #tpu.memory_space<vmem>>, vector<8x128xf32>
    %264 = arith.truncf %257 : vector<8x32xf32> to vector<8x32xbf16>
    %c0_87 = arith.constant 0 : index
    %c0_88 = arith.constant 0 : index
    %265 = vector.load %arg5[%c0_87, %c0_88] : memref<32x128xbf16, #tpu.memory_space<vmem>>, vector<32x128xbf16>
    %cst_89 = arith.constant dense<0.000000e+00> : vector<8x128xf32>
    %266 = tpu.matmul %264, %265, %cst_89 {dimension_numbers = #tpu.dot_dimension_numbers<[1], [0], [0], [1], [0, 0, 1, 1], [], []>} : vector<8x32xbf16>, vector<32x128xbf16>, vector<8x128xf32> -> vector<8x128xf32>
    %267 = arith.addf %263, %266 : vector<8x128xf32>
    %268 = arith.mulf %267, %8 : vector<8x128xf32>
    %269 = math.tanh %268 : vector<8x128xf32>
    %270 = arith.mulf %269, %8 : vector<8x128xf32>
    %271 = arith.addf %270, %11 : vector<8x128xf32>
    %272 = vector.extract_strided_slice %271 {offsets = [0, 0], sizes = [8, 32], strides = [1, 1]} : vector<8x128xf32> to vector<8x32xf32>
    %273 = vector.extract_strided_slice %271 {offsets = [0, 32], sizes = [8, 32], strides = [1, 1]} : vector<8x128xf32> to vector<8x32xf32>
    %274 = vector.extract_strided_slice %271 {offsets = [0, 64], sizes = [8, 32], strides = [1, 1]} : vector<8x128xf32> to vector<8x32xf32>
    %275 = vector.extract_strided_slice %271 {offsets = [0, 96], sizes = [8, 32], strides = [1, 1]} : vector<8x128xf32> to vector<8x32xf32>
    %276 = arith.mulf %273, %255 : vector<8x32xf32>
    %277 = arith.mulf %272, %274 : vector<8x32xf32>
    %278 = arith.addf %276, %277 : vector<8x32xf32>
    %279 = math.tanh %278 : vector<8x32xf32>
    %280 = arith.mulf %275, %279 : vector<8x32xf32>
    %281 = arith.index_cast %261 : i32 to index
    %c0_90 = arith.constant 0 : index
    %282 = vector.load %arg11[%281, %c0_90] : memref<64x32xf32, #tpu.memory_space<vmem>>, vector<8x32xf32>
    tpu.vector_store %arg11[%281, %c0_90], %280 {strides = array<i32>} : memref<64x32xf32, #tpu.memory_space<vmem>>, vector<8x32xf32>,
    %c3_i32_91 = arith.constant 3 : i32
    %c8_i32_92 = arith.constant 8 : i32
    %283 = arith.muli %c3_i32_91, %c8_i32_92 : i32
    %284 = tpu.assume_multiple %283, 8 : i32
    %285 = arith.index_cast %284 : i32 to index
    %c0_93 = arith.constant 0 : index
    %286 = vector.load %arg10[%285, %c0_93] : memref<64x128xf32, #tpu.memory_space<vmem>>, vector<8x128xf32>
    %287 = arith.truncf %280 : vector<8x32xf32> to vector<8x32xbf16>
    %c0_94 = arith.constant 0 : index
    %c0_95 = arith.constant 0 : index
    %288 = vector.load %arg5[%c0_94, %c0_95] : memref<32x128xbf16, #tpu.memory_space<vmem>>, vector<32x128xbf16>
    %cst_96 = arith.constant dense<0.000000e+00> : vector<8x128xf32>
    %289 = tpu.matmul %287, %288, %cst_96 {dimension_numbers = #tpu.dot_dimension_numbers<[1], [0], [0], [1], [0, 0, 1, 1], [], []>} : vector<8x32xbf16>, vector<32x128xbf16>, vector<8x128xf32> -> vector<8x128xf32>
    %290 = arith.addf %286, %289 : vector<8x128xf32>
    %291 = arith.mulf %290, %8 : vector<8x128xf32>
    %292 = math.tanh %291 : vector<8x128xf32>
    %293 = arith.mulf %292, %8 : vector<8x128xf32>
    %294 = arith.addf %293, %11 : vector<8x128xf32>
    %295 = vector.extract_strided_slice %294 {offsets = [0, 0], sizes = [8, 32], strides = [1, 1]} : vector<8x128xf32> to vector<8x32xf32>
    %296 = vector.extract_strided_slice %294 {offsets = [0, 32], sizes = [8, 32], strides = [1, 1]} : vector<8x128xf32> to vector<8x32xf32>
    %297 = vector.extract_strided_slice %294 {offsets = [0, 64], sizes = [8, 32], strides = [1, 1]} : vector<8x128xf32> to vector<8x32xf32>
    %298 = vector.extract_strided_slice %294 {offsets = [0, 96], sizes = [8, 32], strides = [1, 1]} : vector<8x128xf32> to vector<8x32xf32>
    %299 = arith.mulf %296, %278 : vector<8x32xf32>
    %300 = arith.mulf %295, %297 : vector<8x32xf32>
    %301 = arith.addf %299, %300 : vector<8x32xf32>
    %302 = math.tanh %301 : vector<8x32xf32>
    %303 = arith.mulf %298, %302 : vector<8x32xf32>
    %304 = arith.index_cast %284 : i32 to index
    %c0_97 = arith.constant 0 : index
    %305 = vector.load %arg11[%304, %c0_97] : memref<64x32xf32, #tpu.memory_space<vmem>>, vector<8x32xf32>
    tpu.vector_store %arg11[%304, %c0_97], %303 {strides = array<i32>} : memref<64x32xf32, #tpu.memory_space<vmem>>, vector<8x32xf32>,
    %c4_i32_98 = arith.constant 4 : i32
    %c8_i32_99 = arith.constant 8 : i32
    %306 = arith.muli %c4_i32_98, %c8_i32_99 : i32
    %307 = tpu.assume_multiple %306, 8 : i32
    %308 = arith.index_cast %307 : i32 to index
    %c0_100 = arith.constant 0 : index
    %309 = vector.load %arg10[%308, %c0_100] : memref<64x128xf32, #tpu.memory_space<vmem>>, vector<8x128xf32>
    %310 = arith.truncf %303 : vector<8x32xf32> to vector<8x32xbf16>
    %c0_101 = arith.constant 0 : index
    %c0_102 = arith.constant 0 : index
    %311 = vector.load %arg5[%c0_101, %c0_102] : memref<32x128xbf16, #tpu.memory_space<vmem>>, vector<32x128xbf16>
    %cst_103 = arith.constant dense<0.000000e+00> : vector<8x128xf32>
    %312 = tpu.matmul %310, %311, %cst_103 {dimension_numbers = #tpu.dot_dimension_numbers<[1], [0], [0], [1], [0, 0, 1, 1], [], []>} : vector<8x32xbf16>, vector<32x128xbf16>, vector<8x128xf32> -> vector<8x128xf32>
    %313 = arith.addf %309, %312 : vector<8x128xf32>
    %314 = arith.mulf %313, %8 : vector<8x128xf32>
    %315 = math.tanh %314 : vector<8x128xf32>
    %316 = arith.mulf %315, %8 : vector<8x128xf32>
    %317 = arith.addf %316, %11 : vector<8x128xf32>
    %318 = vector.extract_strided_slice %317 {offsets = [0, 0], sizes = [8, 32], strides = [1, 1]} : vector<8x128xf32> to vector<8x32xf32>
    %319 = vector.extract_strided_slice %317 {offsets = [0, 32], sizes = [8, 32], strides = [1, 1]} : vector<8x128xf32> to vector<8x32xf32>
    %320 = vector.extract_strided_slice %317 {offsets = [0, 64], sizes = [8, 32], strides = [1, 1]} : vector<8x128xf32> to vector<8x32xf32>
    %321 = vector.extract_strided_slice %317 {offsets = [0, 96], sizes = [8, 32], strides = [1, 1]} : vector<8x128xf32> to vector<8x32xf32>
    %322 = arith.mulf %319, %301 : vector<8x32xf32>
    %323 = arith.mulf %318, %320 : vector<8x32xf32>
    %324 = arith.addf %322, %323 : vector<8x32xf32>
    %325 = math.tanh %324 : vector<8x32xf32>
    %326 = arith.mulf %321, %325 : vector<8x32xf32>
    %327 = arith.index_cast %307 : i32 to index
    %c0_104 = arith.constant 0 : index
    %328 = vector.load %arg11[%327, %c0_104] : memref<64x32xf32, #tpu.memory_space<vmem>>, vector<8x32xf32>
    tpu.vector_store %arg11[%327, %c0_104], %326 {strides = array<i32>} : memref<64x32xf32, #tpu.memory_space<vmem>>, vector<8x32xf32>,
    %c5_i32_105 = arith.constant 5 : i32
    %c8_i32_106 = arith.constant 8 : i32
    %329 = arith.muli %c5_i32_105, %c8_i32_106 : i32
    %330 = tpu.assume_multiple %329, 8 : i32
    %331 = arith.index_cast %330 : i32 to index
    %c0_107 = arith.constant 0 : index
    %332 = vector.load %arg10[%331, %c0_107] : memref<64x128xf32, #tpu.memory_space<vmem>>, vector<8x128xf32>
    %333 = arith.truncf %326 : vector<8x32xf32> to vector<8x32xbf16>
    %c0_108 = arith.constant 0 : index
    %c0_109 = arith.constant 0 : index
    %334 = vector.load %arg5[%c0_108, %c0_109] : memref<32x128xbf16, #tpu.memory_space<vmem>>, vector<32x128xbf16>
    %cst_110 = arith.constant dense<0.000000e+00> : vector<8x128xf32>
    %335 = tpu.matmul %333, %334, %cst_110 {dimension_numbers = #tpu.dot_dimension_numbers<[1], [0], [0], [1], [0, 0, 1, 1], [], []>} : vector<8x32xbf16>, vector<32x128xbf16>, vector<8x128xf32> -> vector<8x128xf32>
    %336 = arith.addf %332, %335 : vector<8x128xf32>
    %337 = arith.mulf %336, %8 : vector<8x128xf32>
    %338 = math.tanh %337 : vector<8x128xf32>
    %339 = arith.mulf %338, %8 : vector<8x128xf32>
    %340 = arith.addf %339, %11 : vector<8x128xf32>
    %341 = vector.extract_strided_slice %340 {offsets = [0, 0], sizes = [8, 32], strides = [1, 1]} : vector<8x128xf32> to vector<8x32xf32>
    %342 = vector.extract_strided_slice %340 {offsets = [0, 32], sizes = [8, 32], strides = [1, 1]} : vector<8x128xf32> to vector<8x32xf32>
    %343 = vector.extract_strided_slice %340 {offsets = [0, 64], sizes = [8, 32], strides = [1, 1]} : vector<8x128xf32> to vector<8x32xf32>
    %344 = vector.extract_strided_slice %340 {offsets = [0, 96], sizes = [8, 32], strides = [1, 1]} : vector<8x128xf32> to vector<8x32xf32>
    %345 = arith.mulf %342, %324 : vector<8x32xf32>
    %346 = arith.mulf %341, %343 : vector<8x32xf32>
    %347 = arith.addf %345, %346 : vector<8x32xf32>
    %348 = math.tanh %347 : vector<8x32xf32>
    %349 = arith.mulf %344, %348 : vector<8x32xf32>
    %350 = arith.index_cast %330 : i32 to index
    %c0_111 = arith.constant 0 : index
    %351 = vector.load %arg11[%350, %c0_111] : memref<64x32xf32, #tpu.memory_space<vmem>>, vector<8x32xf32>
    tpu.vector_store %arg11[%350, %c0_111], %349 {strides = array<i32>} : memref<64x32xf32, #tpu.memory_space<vmem>>, vector<8x32xf32>,
    %c6_i32_112 = arith.constant 6 : i32
    %c8_i32_113 = arith.constant 8 : i32
    %352 = arith.muli %c6_i32_112, %c8_i32_113 : i32
    %353 = tpu.assume_multiple %352, 8 : i32
    %354 = arith.index_cast %353 : i32 to index
    %c0_114 = arith.constant 0 : index
    %355 = vector.load %arg10[%354, %c0_114] : memref<64x128xf32, #tpu.memory_space<vmem>>, vector<8x128xf32>
    %356 = arith.truncf %349 : vector<8x32xf32> to vector<8x32xbf16>
    %c0_115 = arith.constant 0 : index
    %c0_116 = arith.constant 0 : index
    %357 = vector.load %arg5[%c0_115, %c0_116] : memref<32x128xbf16, #tpu.memory_space<vmem>>, vector<32x128xbf16>
    %cst_117 = arith.constant dense<0.000000e+00> : vector<8x128xf32>
    %358 = tpu.matmul %356, %357, %cst_117 {dimension_numbers = #tpu.dot_dimension_numbers<[1], [0], [0], [1], [0, 0, 1, 1], [], []>} : vector<8x32xbf16>, vector<32x128xbf16>, vector<8x128xf32> -> vector<8x128xf32>
    %359 = arith.addf %355, %358 : vector<8x128xf32>
    %360 = arith.mulf %359, %8 : vector<8x128xf32>
    %361 = math.tanh %360 : vector<8x128xf32>
    %362 = arith.mulf %361, %8 : vector<8x128xf32>
    %363 = arith.addf %362, %11 : vector<8x128xf32>
    %364 = vector.extract_strided_slice %363 {offsets = [0, 0], sizes = [8, 32], strides = [1, 1]} : vector<8x128xf32> to vector<8x32xf32>
    %365 = vector.extract_strided_slice %363 {offsets = [0, 32], sizes = [8, 32], strides = [1, 1]} : vector<8x128xf32> to vector<8x32xf32>
    %366 = vector.extract_strided_slice %363 {offsets = [0, 64], sizes = [8, 32], strides = [1, 1]} : vector<8x128xf32> to vector<8x32xf32>
    %367 = vector.extract_strided_slice %363 {offsets = [0, 96], sizes = [8, 32], strides = [1, 1]} : vector<8x128xf32> to vector<8x32xf32>
    %368 = arith.mulf %365, %347 : vector<8x32xf32>
    %369 = arith.mulf %364, %366 : vector<8x32xf32>
    %370 = arith.addf %368, %369 : vector<8x32xf32>
    %371 = math.tanh %370 : vector<8x32xf32>
    %372 = arith.mulf %367, %371 : vector<8x32xf32>
    %373 = arith.index_cast %353 : i32 to index
    %c0_118 = arith.constant 0 : index
    %374 = vector.load %arg11[%373, %c0_118] : memref<64x32xf32, #tpu.memory_space<vmem>>, vector<8x32xf32>
    tpu.vector_store %arg11[%373, %c0_118], %372 {strides = array<i32>} : memref<64x32xf32, #tpu.memory_space<vmem>>, vector<8x32xf32>,
    %c7_i32_119 = arith.constant 7 : i32
    %c8_i32_120 = arith.constant 8 : i32
    %375 = arith.muli %c7_i32_119, %c8_i32_120 : i32
    %376 = tpu.assume_multiple %375, 8 : i32
    %377 = arith.index_cast %376 : i32 to index
    %c0_121 = arith.constant 0 : index
    %378 = vector.load %arg10[%377, %c0_121] : memref<64x128xf32, #tpu.memory_space<vmem>>, vector<8x128xf32>
    %379 = arith.truncf %372 : vector<8x32xf32> to vector<8x32xbf16>
    %c0_122 = arith.constant 0 : index
    %c0_123 = arith.constant 0 : index
    %380 = vector.load %arg5[%c0_122, %c0_123] : memref<32x128xbf16, #tpu.memory_space<vmem>>, vector<32x128xbf16>
    %cst_124 = arith.constant dense<0.000000e+00> : vector<8x128xf32>
    %381 = tpu.matmul %379, %380, %cst_124 {dimension_numbers = #tpu.dot_dimension_numbers<[1], [0], [0], [1], [0, 0, 1, 1], [], []>} : vector<8x32xbf16>, vector<32x128xbf16>, vector<8x128xf32> -> vector<8x128xf32>
    %382 = arith.addf %378, %381 : vector<8x128xf32>
    %383 = arith.mulf %382, %8 : vector<8x128xf32>
    %384 = math.tanh %383 : vector<8x128xf32>
    %385 = arith.mulf %384, %8 : vector<8x128xf32>
    %386 = arith.addf %385, %11 : vector<8x128xf32>
    %387 = vector.extract_strided_slice %386 {offsets = [0, 0], sizes = [8, 32], strides = [1, 1]} : vector<8x128xf32> to vector<8x32xf32>
    %388 = vector.extract_strided_slice %386 {offsets = [0, 32], sizes = [8, 32], strides = [1, 1]} : vector<8x128xf32> to vector<8x32xf32>
    %389 = vector.extract_strided_slice %386 {offsets = [0, 64], sizes = [8, 32], strides = [1, 1]} : vector<8x128xf32> to vector<8x32xf32>
    %390 = vector.extract_strided_slice %386 {offsets = [0, 96], sizes = [8, 32], strides = [1, 1]} : vector<8x128xf32> to vector<8x32xf32>
    %391 = arith.mulf %388, %370 : vector<8x32xf32>
    %392 = arith.mulf %387, %389 : vector<8x32xf32>
    %393 = arith.addf %391, %392 : vector<8x32xf32>
    %394 = math.tanh %393 : vector<8x32xf32>
    %395 = arith.mulf %390, %394 : vector<8x32xf32>
    %396 = arith.index_cast %376 : i32 to index
    %c0_125 = arith.constant 0 : index
    %397 = vector.load %arg11[%396, %c0_125] : memref<64x32xf32, #tpu.memory_space<vmem>>, vector<8x32xf32>
    tpu.vector_store %arg11[%396, %c0_125], %395 {strides = array<i32>} : memref<64x32xf32, #tpu.memory_space<vmem>>, vector<8x32xf32>,
    %c8_i32_126 = arith.constant 8 : i32
    %c0_127 = arith.constant 0 : index
    %c0_128 = arith.constant 0 : index
    %398 = vector.load %arg11[%c0_127, %c0_128] : memref<64x32xf32, #tpu.memory_space<vmem>>, vector<64x32xf32>
    %cst_129 = arith.constant 0.000000e+00 : f32
    %399 = vector.broadcast %cst_129 : f32 to vector<64x32xf32>
    %400 = arith.maximumf %398, %399 : vector<64x32xf32>
    %401 = vector.broadcast %cst_129 : f32 to vector<64x32xf32>
    %402 = arith.subf %398, %401 : vector<64x32xf32>
    %403 = arith.cmpf one, %402, %402 : vector<64x32xf32>
    %404 = vector.broadcast %cst_129 : f32 to vector<64x32xf32>
    %405 = arith.addf %398, %404 : vector<64x32xf32>
    %406 = math.absf %402 : vector<64x32xf32>
    %cst_130 = arith.constant 0.000000e+00 : f32
    %407 = vector.broadcast %cst_130 : f32 to vector<64x32xf32>
    %408 = arith.subf %407, %406 : vector<64x32xf32>
    %409 = math.exp %408 : vector<64x32xf32>
    %410 = math.log1p %409 : vector<64x32xf32>
    %411 = arith.addf %400, %410 : vector<64x32xf32>
    %412 = arith.select %403, %405, %411 : vector<64x32xi1>, vector<64x32xf32>
    %413 = arith.truncf %412 : vector<64x32xf32> to vector<64x32xbf16>
    %c0_131 = arith.constant 0 : index
    %c0_132 = arith.constant 0 : index
    %414 = vector.load %arg7[%c0_131, %c0_132] : memref<32x128xbf16, #tpu.memory_space<vmem>>, vector<32x128xbf16>
    %cst_133 = arith.constant dense<0.000000e+00> : vector<64x128xf32>
    %415 = tpu.matmul %413, %414, %cst_133 {dimension_numbers = #tpu.dot_dimension_numbers<[1], [0], [0], [1], [0, 0, 1, 1], [], []>} : vector<64x32xbf16>, vector<32x128xbf16>, vector<64x128xf32> -> vector<64x128xf32>
    %c0_134 = arith.constant 0 : index
    %c0_135 = arith.constant 0 : index
    %416 = vector.load %arg8[%c0_134, %c0_135] : memref<1x128xf32, #tpu.memory_space<vmem>>, vector<1x128xf32>
    %417 = vector.broadcast %416 : vector<1x128xf32> to vector<64x128xf32>
    %418 = arith.addf %415, %417 : vector<64x128xf32>
    %c0_136 = arith.constant 0 : index
    %c0_137 = arith.constant 0 : index
    %419 = vector.load %arg9[%c0_136, %c0_137] : memref<64x128xf32, #tpu.memory_space<vmem>>, vector<64x128xf32>
    tpu.vector_store %arg9[%c0_136, %c0_137], %418 {strides = array<i32>} : memref<64x128xf32, #tpu.memory_space<vmem>>, vector<64x128xf32>,
    return
  }
}

</mosaic_0001>

<bundles_post_ra>
// kernel: lstm_rnn_forward.1
= control target key start
LH: loop header
LB: loop body
LE: loop exit
PB: predicated region body
PF: predicated region fallthrough
CT: control target
= control target key end

     0   :  { %vm64_vm0 = vcmask 130048   ;;  %v1769_v9 = vmov 0   ;;  %v33_v11 = vlaneseq  ;;  %v1770_v17 = vmov 0.5   ;;  %s1772_s24 = smov 32   ;;  %s2311_s1 = inlined_call_operand.vmem [shape: bf16[16,128], index: 1, kind: input, shape index: {}]   ;;  %s2312_s0 = inlined_call_operand.vmem [shape: f32[64,16], index: 0, kind: input, shape index: {}]   ;;  %s2313_s2 = inlined_call_operand.vmem [shape: bf16[32,128], index: 2, kind: input, shape index: {}]   ;;  %s2314_s3 = inlined_call_operand.vmem [shape: f32[1,128], index: 3, kind: input, shape index: {}]   ;;  %s2315_s4 = inlined_call_operand.vmem [shape: bf16[32,128], index: 4, kind: input, shape index: {}]   ;;  %s2316_s6 = inlined_call_operand.vmem [shape: f32[1,128], index: 6, kind: input, shape index: {}]   ;;  %s2317_s5 = inlined_call_operand.vmem [shape: bf16[32,128], index: 5, kind: input, shape index: {}]   ;;  %s2318_s8 = inlined_call_operand.vmem [shape: f32[1,128], index: 8, kind: input, shape index: {}]   ;;  %s2319_s7 = inlined_call_operand.vmem [shape: bf16[32,128], index: 7, kind: input, shape index: {}]   ;;  %s2320_s9 = inlined_call_operand.vmem [shape: f32[64,128], index: 9, kind: output, shape index: {}]  }
   0x1   :  { %v1626_v0 = vld [vmem:[%s2311_s1] sm:$0xff]  ;;  %v42_v1 = vld [vmem:[%s2312_s0 + $0x10] sm:$0xff]  ;;  %v43_v2 = vld [vmem:[%s2312_s0 + $0x18] sm:$0xff]  ;;  %vm131_vm4 = vcmask 261120  }
   0x2   :  { %v49_v3 = vpack.c.bf16 %v43_v2, %v42_v1  ;;  %v1628_v4 = vld [vmem:[%s2313_s2 + $0x8] sm:$0xff]  ;;  %v40_v5 = vld [vmem:[%s2312_s0] sm:$0xff]  ;;  %1663 = vmatpush.bf16.msra.mxu1 %v1626_v0  ;;  %84 = vmatpush.bf16.msra.mxu0 %v1626_v0  ;;  %v34_v12 = vand.u32 127, %v33_v11  ;;  %v46_v59 = vld [vmem:[%s2312_s0 + $0x30] sm:$0xff] }
   0x3   :  { %v41_v6 = vld [vmem:[%s2312_s0 + $0x8] sm:$0xff]  ;;  %v1627_v8 = vld [vmem:[%s2313_s2] sm:$0xff]  ;;  %1664 = vmatpush.bf16.msra.mxu2 %v1626_v0  ;;  %1665 = vmatpush.bf16.msra.mxu3 %v1626_v0  ;;  %v47_v60 = vld [vmem:[%s2312_s0 + $0x38] sm:$0xff] }
   0x4   :  { %v48_v7 = vpack.c.bf16 %v41_v6, %v40_v5  ;;  %vm35_vm1 = vcmp.ge.s32.totalorder %v34_v12, 64  ;;  %vm36_vm2 = vcmp.lt.s32.totalorder %v34_v12, 96  ;;  %v1854_v14 = vld [vmem:[%s2314_s3] ss:$0 sm:$0xff]  ;;  %s1771_s3 = smov 64   ;;  %v45_v34 = vld [vmem:[%s2312_s0 + $0x28] sm:$0xff]  ;;  %v51_v62 = vpack.c.bf16 %v47_v60, %v46_v59 }
   0x5   :  { %1457 = vmatmul.msk.bf16.vlgmr.msra.gmra.mxu1 %vm64_vm0, %v49_v3  ;;  %vm37_vm3 = vmand %vm35_vm1, %vm36_vm2  ;;  %v44_v33 = vld [vmem:[%s2312_s0 + $0x20] sm:$0xff]  ;;  %v1630_v35 = vld [vmem:[%s2313_s2 + $0x8] sm:$0xff] }
   0x6   :  { %141 = vmatpush.bf16.msrb.mxu1 %v1628_v4  ;;  %1456 = vmatmul.msk.bf16.vlgmr.msra.gmra.mxu0 %vm64_vm0, %v48_v7  ;;  %v1857_v18 = vsel %vm37_vm3, 1.0, %v1770_v17  ;;  %v1860_v24 = vsel %vm37_vm3, 0.0, %v1770_v17  ;;  %v50_v36 = vpack.c.bf16 %v45_v34, %v44_v33  ;;  %v1629_v37 = vld [vmem:[%s2313_s2] sm:$0xff]  ;;  %v1632_v61 = vld [vmem:[%s2313_s2 + $0x8] sm:$0xff] }
   0x7   :  { %206 = vmatpush.bf16.msrb.mxu2 %v1630_v35  ;;  %272 = vmatpush.bf16.msrb.mxu3 %v1632_v61  ;;  %v1631_v63 = vld [vmem:[%s2313_s2] sm:$0xff] }
   0x8   :  { %1458 = vmatmul.msk.bf16.vlgmr.msra.gmra.mxu2 %vm64_vm0, %v50_v36  ;;  %1459 = vmatmul.msk.bf16.vlgmr.msra.gmra.mxu3 %vm64_vm0, %v51_v62 }
   0xa   :  { %142 = vmatpush.bf16.msrb.mxu1 %v1627_v8 }
   0xb   :  { %207 = vmatpush.bf16.msrb.mxu2 %v1629_v37  ;;  %273 = vmatpush.bf16.msrb.mxu3 %v1631_v63 }
  0x15   :  { %143 = vmatmul.bf16.vlgmr.msrb.gmra.mxu1 %v1769_v9 }
  0x82   :  { %v1847_v10 = vpop.f32.mrf.mxu1 }
  0x83   :  { %v86_v15 = vpop.f32.mrf.mxu0  ;;  %v92_v6 = vadd.f32 %v1854_v14, %v1847_v10 }
  0x84   :  { %v87_v16 = vadd.f32 %v1854_v14, %v86_v15 }
  0x8a   :  { %v1849_v13 = vpop.f32.mrf.mxu1 }
  0x8b   :  { %v1886_v42 = vpop.f32.mrf.mxu2  ;;  %v88_v44 = vpop.f32.mrf.mxu0 }
  0x8c   :  { %v89_v45 = vadd.f32 %v1854_v14, %v88_v44  ;;  %v1916_v4 = vpop.f32.mrf.mxu3 }
  0x92   :  { %v144_v19 = vpop.f32.mrf.mxu1 }
  0x93   :  { %v148_v20 = vadd.f32 %v144_v19, %v87_v16  ;;  %v1888_v43 = vpop.f32.mrf.mxu2 }
  0x94   :  { %v1918_v5 = vpop.f32.mrf.mxu3 }
  0x95   :  { %v149_v21 = vmul.f32 %v148_v20, %v1857_v18 }
  0x97   :  { %1673 = vtanh.f32 %v149_v21 }
  0x9a   :  { %v146_v22 = vpop.f32.mrf.mxu1 }
  0x9d   :  { %v1674_v23 = vpop.eup %1673 }
  0x9e   :  { %v151_v25 = vmul.f32 %v1674_v23, %v1857_v18 }
  0xa0   :  { %v152_v26 = vadd.f32 %v151_v25, %v1860_v24  ;;  %v1634_v25 = vld [vmem:[%s2313_s2 + $0x8] sm:$0xff] }
  0xa1   :  { %338 = vmatpush.bf16.msra.mxu1 %v1634_v25 }
  0xa2   :  { %155 = vrot.lane.b32.xlu0 %v152_v26, %s1771_s3  ;;  %v153_v29 = vmul.f32 0.0, %v152_v26 }
 0x114   :  { %v156_v27 = vpop.permute.xlu0 %155 }
 0x115   :  { %v158_v28 = vmul.f32 %v156_v27, %v152_v26 }
 0x117   :  { %160 = vrot.lane.b32.xlu0 %v158_v28, %s1772_s24 }
 0x189   :  { %v161_v30 = vpop.permute.xlu0 %160 }
 0x18a   :  { %v163_v31 = vadd.f32 %v161_v30, %v153_v29 }
 0x18c   :  { %1675 = vtanh.f32 %v163_v31 }
 0x192   :  { %v1676_v32 = vpop.eup %1675 }
 0x193   :  { %166 = vrot.lane.b32.xlu1 %v1676_v32, %s1771_s3 }
 0x205   :  { %v167_v38 = vpop.permute.xlu1 %166 }
 0x206   :  { %v1880_v39 = vmul.f32 %v167_v38, %v152_v26  ;;  %v1633_v26 = vld [vmem:[%s2313_s2] sm:$0xff] }
 0x207   :  { %339 = vmatpush.bf16.msra.mxu1 %v1633_v26  ;;  %v1644_v26 = vld [vmem:[%s2315_s4 + $0x8] sm:$0xff] }
 0x208   :  { %v177_v40 = vpack.c.bf16 %v1880_v39, %v1880_v39 }
 0x20a   :  { %183 = vrot.lane.b32.xlu1 %v177_v40, %s1772_s24 }
 0x27c   :  { %v184_v41 = vpop.permute.xlu1 %183 }
 0x27d   :  { %1476 = vmatmul.msk.bf16.vlgmr.msrb.gmra.mxu2 %vm131_vm4, %v184_v41 }
 0x300   :  { %v209_v46 = vpop.f32.mrf.mxu2 }
 0x301   :  { %v213_v47 = vadd.f32 %v209_v46, %v89_v45 }
 0x303   :  { %v214_v48 = vmul.f32 %v213_v47, %v1857_v18  ;;  %v1636_v47 = vld [vmem:[%s2313_s2 + $0x8] sm:$0xff] }
 0x304   :  { %404 = vmatpush.bf16.msra.mxu2 %v1636_v47 }
 0x305   :  { %1677 = vtanh.f32 %v214_v48  ;;  %v1635_v48 = vld [vmem:[%s2313_s2] sm:$0xff] }
 0x308   :  { %v211_v49 = vpop.f32.mrf.mxu2  ;;  %405 = vmatpush.bf16.msra.mxu2 %v1635_v48 }
 0x30b   :  { %v1678_v50 = vpop.eup %1677 }
 0x30c   :  { %v216_v51 = vmul.f32 %v1678_v50, %v1857_v18 }
 0x30e   :  { %v217_v52 = vadd.f32 %v216_v51, %v1860_v24 }
 0x310   :  { %220 = vrot.lane.b32.xlu2 %v217_v52, %s1771_s3  ;;  %v218_v55 = vmul.f32 %v217_v52, %v163_v31  ;;  %v94_v31 = vadd.f32 %v1854_v14, %v1849_v13 }
 0x36a   :  { %v221_v53 = vpop.permute.xlu2 %220 }
 0x36b   :  { %v223_v54 = vmul.f32 %v221_v53, %v217_v52  ;;  %v97_v53 = vadd.f32 %v1854_v14, %v1886_v42 }
 0x36d   :  { %225 = vrot.lane.b32.xlu2 %v223_v54, %s1772_s24 }
 0x3c7   :  { %v226_v56 = vpop.permute.xlu2 %225 }
 0x3c8   :  { %v228_v57 = vadd.f32 %v226_v56, %v218_v55 }
 0x3ca   :  { %1679 = vtanh.f32 %v228_v57 }
 0x3d0   :  { %v1680_v58 = vpop.eup %1679 }
 0x3d1   :  { %231 = vrot.lane.b32.xlu0 %v1680_v58, %s1771_s3 }
 0x443   :  { %v232_v0 = vpop.permute.xlu0 %231 }
 0x444   :  { %v1910_v1 = vmul.f32 %v232_v0, %v217_v52 }
 0x446   :  { %v243_v2 = vpack.c.bf16 %v1910_v1, %v1910_v1 }
 0x448   :  { %249 = vrot.lane.b32.xlu1 %v243_v2, %s1772_s24 }
 0x4ba   :  { %v250_v3 = vpop.permute.xlu1 %249 }
 0x4bb   :  { %1485 = vmatmul.msk.bf16.vlgmr.msrb.gmra.mxu3 %vm131_vm4, %v250_v3  ;;  %v1638_v3 = vld [vmem:[%s2313_s2 + $0x8] sm:$0xff] }
 0x4bc   :  { %470 = vmatpush.bf16.msra.mxu3 %v1638_v3 }
 0x53e   :  { %v275_v7 = vpop.f32.mrf.mxu3 }
 0x53f   :  { %v279_v8 = vadd.f32 %v275_v7, %v92_v6  ;;  %v1637_v6 = vld [vmem:[%s2313_s2] sm:$0xff] }
 0x540   :  { %471 = vmatpush.bf16.msra.mxu3 %v1637_v6 }
 0x541   :  { %v280_v11 = vmul.f32 %v279_v8, %v1857_v18 }
 0x543   :  { %1681 = vtanh.f32 %v280_v11 }
 0x544   :  { %687 = vmatpush.bf16.msrb.mxu3 %v1644_v26  ;;  %v1647_v26 = vld [vmem:[%s2317_s5] sm:$0xff] }
 0x546   :  { %v277_v12 = vpop.f32.mrf.mxu3 }
 0x549   :  { %v1682_v15 = vpop.eup %1681 }
 0x54a   :  { %v282_v16 = vmul.f32 %v1682_v15, %v1857_v18  ;;  %v99_v15 = vadd.f32 %v1854_v14, %v1888_v43 }
 0x54c   :  { %v283_v17 = vadd.f32 %v282_v16, %v1860_v24 }
 0x54e   :  { %286 = vrot.lane.b32.xlu2 %v283_v17, %s1771_s3  ;;  %v284_v21 = vmul.f32 %v283_v17, %v228_v57 }
 0x5a8   :  { %v287_v19 = vpop.permute.xlu2 %286 }
 0x5a9   :  { %v289_v20 = vmul.f32 %v287_v19, %v283_v17 }
 0x5ab   :  { %291 = vrot.lane.b32.xlu0 %v289_v20, %s1772_s24 }
 0x61d   :  { %v292_v22 = vpop.permute.xlu0 %291 }
 0x61e   :  { %v294_v10 = vadd.f32 %v292_v22, %v284_v21 }
 0x620   :  { %1683 = vtanh.f32 %v294_v10 }
 0x626   :  { %v1684_v23 = vpop.eup %1683 }
 0x627   :  { %297 = vrot.lane.b32.xlu1 %v1684_v23, %s1771_s3 }
 0x699   :  { %v298_v27 = vpop.permute.xlu1 %297 }
 0x69a   :  { %v1934_v28 = vmul.f32 %v298_v27, %v283_v17  ;;  %v1643_v27 = vld [vmem:[%s2315_s4] sm:$0xff] }
 0x69b   :  { %688 = vmatpush.bf16.msrb.mxu3 %v1643_v27 }
 0x69c   :  { %v309_v29 = vpack.c.bf16 %v1934_v28, %v1934_v28 }
 0x69e   :  { %315 = vrot.lane.b32.xlu2 %v309_v29, %s1772_s24 }
 0x6f8   :  { %v316_v30 = vpop.permute.xlu2 %315 }
 0x6f9   :  { %1494 = vmatmul.msk.bf16.vlgmr.msra.gmra.mxu1 %vm131_vm4, %v316_v30 }
 0x776   :  { %v341_v32 = vpop.f32.mrf.mxu1 }
 0x777   :  { %v345_v33 = vadd.f32 %v341_v32, %v94_v31 }
 0x779   :  { %v346_v34 = vmul.f32 %v345_v33, %v1857_v18 }
 0x77b   :  { %1685 = vtanh.f32 %v346_v34 }
 0x77e   :  { %v343_v35 = vpop.f32.mrf.mxu1 }
 0x781   :  { %v1686_v36 = vpop.eup %1685 }
 0x782   :  { %v348_v37 = vmul.f32 %v1686_v36, %v1857_v18 }
 0x784   :  { %v349_v38 = vadd.f32 %v348_v37, %v1860_v24 }
 0x786   :  { %352 = vrot.lane.b32.xlu0 %v349_v38, %s1771_s3  ;;  %v350_v44 = vmul.f32 %v349_v38, %v294_v10 }
 0x7f8   :  { %v353_v40 = vpop.permute.xlu0 %352 }
 0x7f9   :  { %v355_v41 = vmul.f32 %v353_v40, %v349_v38  ;;  %v1639_v40 = vld [vmem:[%s2313_s2] sm:$0xff] }
 0x7fb   :  { %357 = vrot.lane.b32.xlu1 %v355_v41, %s1772_s24  ;;  %v1646_v41 = vld [vmem:[%s2317_s5 + $0x8] sm:$0xff] }
 0x86d   :  { %v358_v45 = vpop.permute.xlu1 %357 }
 0x86e   :  { %v360_v13 = vadd.f32 %v358_v45, %v350_v44  ;;  %v1645_v44 = vld [vmem:[%s2317_s5] sm:$0xff] }
 0x870   :  { %1687 = vtanh.f32 %v360_v13 }
 0x876   :  { %v1688_v46 = vpop.eup %1687 }
 0x877   :  { %363 = vrot.lane.b32.xlu2 %v1688_v46, %s1771_s3 }
 0x8d1   :  { %v364_v49 = vpop.permute.xlu2 %363 }
 0x8d2   :  { %v1954_v50 = vmul.f32 %v364_v49, %v349_v38  ;;  %v1640_v38 = vld [vmem:[%s2313_s2 + $0x8] sm:$0xff] }
 0x8d3   :  { %536 = vmatpush.bf16.msrb.mxu1 %v1640_v38 }
 0x8d4   :  { %v375_v51 = vpack.c.bf16 %v1954_v50, %v1954_v50 }
 0x8d6   :  { %381 = vrot.lane.b32.xlu0 %v375_v51, %s1772_s24 }
 0x8d7   :  { %537 = vmatpush.bf16.msrb.mxu1 %v1639_v40 }
 0x8db   :  { %741 = vmatpush.bf16.msra.mxu1 %v1646_v41 }
 0x8df   :  { %742 = vmatpush.bf16.msra.mxu1 %v1645_v44 }
 0x948   :  { %v382_v52 = vpop.permute.xlu0 %381 }
 0x949   :  { %1503 = vmatmul.msk.bf16.vlgmr.msra.gmra.mxu2 %vm131_vm4, %v382_v52  ;;  %v2026_v52 = vld [vmem:[%s2316_s6] ss:$0 sm:$0xff] }
 0x9cc   :  { %v407_v54 = vpop.f32.mrf.mxu2 }
 0x9cd   :  { %v411_v55 = vadd.f32 %v407_v54, %v97_v53 }
 0x9cf   :  { %v412_v56 = vmul.f32 %v411_v55, %v1857_v18 }
 0x9d1   :  { %1689 = vtanh.f32 %v412_v56 }
 0x9d4   :  { %v409_v57 = vpop.f32.mrf.mxu2 }
 0x9d7   :  { %v1690_v58 = vpop.eup %1689 }
 0x9d8   :  { %v414_v59 = vmul.f32 %v1690_v58, %v1857_v18 }
 0x9da   :  { %v415_v60 = vadd.f32 %v414_v59, %v1860_v24 }
 0x9dc   :  { %418 = vrot.lane.b32.xlu1 %v415_v60, %s1771_s3  ;;  %v416_v63 = vmul.f32 %v415_v60, %v360_v13  ;;  %v102_v13 = vadd.f32 %v1854_v14, %v1916_v4 }
 0xa4e   :  { %v419_v61 = vpop.permute.xlu1 %418 }
 0xa4f   :  { %v421_v62 = vmul.f32 %v419_v61, %v415_v60 }
 0xa51   :  { %423 = vrot.lane.b32.xlu2 %v421_v62, %s1772_s24 }
 0xaab   :  { %v424_v0 = vpop.permute.xlu2 %423 }
 0xaac   :  { %v426_v42 = vadd.f32 %v424_v0, %v416_v63 }
 0xaae   :  { %1691 = vtanh.f32 %v426_v42 }
 0xab4   :  { %v1692_v2 = vpop.eup %1691 }
 0xab5   :  { %429 = vrot.lane.b32.xlu0 %v1692_v2, %s1771_s3 }
 0xb27   :  { %v430_v7 = vpop.permute.xlu0 %429 }
 0xb28   :  { %v1974_v8 = vmul.f32 %v430_v7, %v415_v60 }
 0xb2a   :  { %v441_v11 = vpack.c.bf16 %v1974_v8, %v1974_v8 }
 0xb2c   :  { %447 = vrot.lane.b32.xlu1 %v441_v11, %s1772_s24 }
 0xb9e   :  { %v448_v12 = vpop.permute.xlu1 %447 }
 0xb9f   :  { %1512 = vmatmul.msk.bf16.vlgmr.msra.gmra.mxu3 %vm131_vm4, %v448_v12 }
 0xc22   :  { %v473_v16 = vpop.f32.mrf.mxu3 }
 0xc23   :  { %v477_v17 = vadd.f32 %v473_v16, %v99_v15 }
 0xc25   :  { %v478_v19 = vmul.f32 %v477_v17, %v1857_v18  ;;  %v1642_v17 = vld [vmem:[%s2313_s2 + $0x8] sm:$0xff] }
 0xc26   :  { %602 = vmatpush.bf16.msrb.mxu2 %v1642_v17  ;;  %v1651_v17 = vld [vmem:[%s2317_s5] sm:$0xff] }
 0xc27   :  { %1693 = vtanh.f32 %v478_v19  ;;  %v1641_v19 = vld [vmem:[%s2313_s2] sm:$0xff] }
 0xc2a   :  { %v475_v20 = vpop.f32.mrf.mxu3  ;;  %603 = vmatpush.bf16.msrb.mxu2 %v1641_v19 }
 0xc2d   :  { %v1694_v21 = vpop.eup %1693 }
 0xc2e   :  { %v480_v22 = vmul.f32 %v1694_v21, %v1857_v18 }
 0xc30   :  { %v481_v10 = vadd.f32 %v480_v22, %v1860_v24 }
 0xc32   :  { %484 = vrot.lane.b32.xlu2 %v481_v10, %s1771_s3 }
 0xc3a   :  { %171 = vrot.lane.b32.xlu2 %v1880_v39, %s1772_s24  ;;  %v482_v39 = vmul.f32 %v481_v10, %v426_v42 }
 0xc8c   :  { %v485_v23 = vpop.permute.xlu2 %484 }
 0xc8d   :  { %v487_v25 = vmul.f32 %v485_v23, %v481_v10 }
 0xc8f   :  { %489 = vrot.lane.b32.xlu0 %v487_v25, %s1772_s24 }
 0xc94   :  { %v172_v43 = vpop.permute.xlu2 %171 }
 0xc95   :  { %174 = vst.msk [vmem:[#allocation3] sm:$0xff] %vm131_vm4, %v172_v43  ;;  %v1648_v43 = vld [vmem:[%s2317_s5 + $0x8] sm:$0xff] }
 0xc96   :  { %805 = vmatpush.bf16.msra.mxu2 %v1648_v43 }
 0xc97   :  { %236 = vrot.lane.b32.xlu0 %v1910_v1, %s1772_s24 }
 0xc9a   :  { %806 = vmatpush.bf16.msra.mxu2 %v1647_v26 }
 0xc9c   :  { %v637_v1 = vld [vmem:[#allocation3] sm:$0xff] }
 0xd01   :  { %v490_v29 = vpop.permute.xlu0 %489 }
 0xd02   :  { %v492_v30 = vadd.f32 %v490_v29, %v482_v39 }
 0xd04   :  { %1695 = vtanh.f32 %v492_v30 }
 0xd09   :  { %v237_v31 = vpop.permute.xlu0 %236 }
 0xd0a   :  { %v1696_v32 = vpop.eup %1695  ;;  %240 = vst.msk [vmem:[#allocation3 + $0x8] sm:$0xff] %vm131_vm4, %v237_v31 }
 0xd0b   :  { %495 = vrot.lane.b32.xlu1 %v1696_v32, %s1771_s3 }
 0xd11   :  { %v638_v33 = vld [vmem:[#allocation3 + $0x8] sm:$0xff] }
 0xd12   :  { %v645_v34 = vpack.c.bf16 %v638_v33, %v637_v1 }
 0xd14   :  { %1539 = vmatmul.msk.bf16.vlgmr.msrb.gmra.mxu3 %vm131_vm4, %v645_v34 }
 0xd7d   :  { %v496_v35 = vpop.permute.xlu1 %495 }
 0xd7e   :  { %v2001_v36 = vmul.f32 %v496_v35, %v481_v10 }
 0xd80   :  { %v507_v37 = vpack.c.bf16 %v2001_v36, %v2001_v36 }
 0xd82   :  { %513 = vrot.lane.b32.xlu1 %v507_v37, %s1772_s24 }
 0xd97   :  { %v690_v53 = vpop.f32.mrf.mxu3 }
 0xd98   :  { %v691_v55 = vadd.f32 %v2026_v52, %v690_v53 }
 0xd9f   :  { %v692_v31 = vpop.f32.mrf.mxu3 }
 0xda0   :  { %v693_v32 = vadd.f32 %v2026_v52, %v692_v31 }
 0xdf4   :  { %v514_v45 = vpop.permute.xlu1 %513 }
 0xdf5   :  { %1521 = vmatmul.msk.bf16.vlgmr.msrb.gmra.mxu1 %vm131_vm4, %v514_v45 }
 0xe05   :  { %743 = vmatmul.bf16.vlgmr.msra.gmra.mxu1 %v1769_v9 }
 0xe72   :  { %v539_v46 = vpop.f32.mrf.mxu1 }
 0xe73   :  { %v543_v47 = vadd.f32 %v539_v46, %v102_v13 }
 0xe75   :  { %v544_v48 = vmul.f32 %v543_v47, %v1857_v18 }
 0xe77   :  { %1697 = vtanh.f32 %v544_v48 }
 0xe7a   :  { %v541_v49 = vpop.f32.mrf.mxu1 }
 0xe7d   :  { %v1698_v51 = vpop.eup %1697 }
 0xe7e   :  { %v546_v54 = vmul.f32 %v1698_v51, %v1857_v18 }
 0xe80   :  { %v547_v9 = vadd.f32 %v546_v54, %v1860_v24 }
 0xe82   :  { %550 = vrot.lane.b32.xlu2 %v547_v9, %s1771_s3  ;;  %v744_v4 = vpop.f32.mrf.mxu1  ;;  %v548_v2 = vmul.f32 %v547_v9, %v492_v30 }
 0xe83   :  { %v748_v56 = vadd.f32 %v744_v4, %v691_v55  ;;  %v1650_v55 = vld [vmem:[%s2317_s5 + $0x8] sm:$0xff]  ;;  %v1649_v4 = vld [vmem:[%s2317_s5] sm:$0xff] }
 0xe84   :  { %869 = vmatpush.bf16.msrb.mxu0 %v1650_v55 }
 0xe85   :  { %v749_v57 = vmul.f32 %v748_v56, %v1857_v18 }
 0xe87   :  { %1699 = vtanh.f32 %v749_v57 }
 0xe88   :  { %870 = vmatpush.bf16.msrb.mxu0 %v1649_v4 }
 0xe8a   :  { %v746_v58 = vpop.f32.mrf.mxu1 }
 0xe8d   :  { %v1700_v59 = vpop.eup %1699 }
 0xe8e   :  { %v751_v60 = vmul.f32 %v1700_v59, %v1857_v18 }
 0xe90   :  { %v752_v61 = vadd.f32 %v751_v60, %v1860_v24 }
 0xe92   :  { %755 = vrot.lane.b32.xlu0 %v752_v61, %s1771_s3  ;;  %v753_v11 = vmul.f32 0.0, %v752_v61 }
 0xedc   :  { %v551_v62 = vpop.permute.xlu2 %550 }
 0xedd   :  { %v553_v63 = vmul.f32 %v551_v62, %v547_v9 }
 0xedf   :  { %555 = vrot.lane.b32.xlu1 %v553_v63, %s1772_s24 }
 0xf04   :  { %v756_v0 = vpop.permute.xlu0 %755 }
 0xf05   :  { %v758_v42 = vmul.f32 %v756_v0, %v752_v61 }
 0xf07   :  { %760 = vrot.lane.b32.xlu2 %v758_v42, %s1772_s24 }
 0xf51   :  { %v556_v3 = vpop.permute.xlu1 %555 }
 0xf52   :  { %v2038_v6 = vadd.f32 %v556_v3, %v548_v2 }
 0xf54   :  { %1701 = vtanh.f32 %v2038_v6 }
 0xf5a   :  { %v1702_v7 = vpop.eup %1701 }
 0xf5b   :  { %561 = vrot.lane.b32.xlu0 %v1702_v7, %s1771_s3 }
 0xf61   :  { %v761_v12 = vpop.permute.xlu2 %760 }
 0xf62   :  { %v763_v15 = vadd.f32 %v761_v12, %v753_v11 }
 0xf64   :  { %1703 = vtanh.f32 %v763_v15 }
 0xf6a   :  { %v1704_v16 = vpop.eup %1703 }
 0xf6b   :  { %766 = vrot.lane.b32.xlu1 %v1704_v16, %s1771_s3  ;;  %v1652_v16 = vld [vmem:[%s2317_s5 + $0x8] sm:$0xff] }
 0xf6c   :  { %933 = vmatpush.bf16.msrb.mxu1 %v1652_v16 }
 0xf70   :  { %934 = vmatpush.bf16.msrb.mxu1 %v1651_v17 }
 0xfcd   :  { %v562_v20 = vpop.permute.xlu0 %561 }
 0xfce   :  { %v2049_v21 = vmul.f32 %v562_v20, %v547_v9 }
 0xfd0   :  { %v573_v22 = vpack.c.bf16 %v2049_v21, %v2049_v21 }
 0xfd2   :  { %579 = vrot.lane.b32.xlu2 %v573_v22, %s1772_s24 }
 0xfdd   :  { %v767_v10 = vpop.permute.xlu1 %766 }
 0xfde   :  { %v2054_v23 = vmul.f32 %v767_v10, %v752_v61 }
 0xfe0   :  { %v776_v25 = vpack.c.bf16 %v2054_v23, %v2054_v23 }
 0xfe2   :  { %782 = vrot.lane.b32.xlu0 %v776_v25, %s1772_s24 }
0x102c   :  { %v580_v27 = vpop.permute.xlu2 %579 }
0x102d   :  { %1530 = vmatmul.msk.bf16.vlgmr.msrb.gmra.mxu2 %vm131_vm4, %v580_v27 }
0x1054   :  { %v783_v39 = vpop.permute.xlu0 %782 }
0x1055   :  { %1559 = vmatmul.msk.bf16.vlgmr.msra.gmra.mxu2 %vm131_vm4, %v783_v39 }
0x10b0   :  { %v2067_v29 = vpop.f32.mrf.mxu2 }
0x10b8   :  { %v607_v30 = vpop.f32.mrf.mxu2 }
0x10d8   :  { %v808_v1 = vpop.f32.mrf.mxu2 }
0x10d9   :  { %v812_v33 = vadd.f32 %v808_v1, %v693_v32 }
0x10db   :  { %v813_v34 = vmul.f32 %v812_v33, %v1857_v18 }
0x10dd   :  { %1705 = vtanh.f32 %v813_v34 }
0x10e0   :  { %v810_v35 = vpop.f32.mrf.mxu2 }
0x10e3   :  { %v1706_v37 = vpop.eup %1705 }
0x10e4   :  { %v815_v38 = vmul.f32 %v1706_v37, %v1857_v18 }
0x10e6   :  { %v816_v40 = vadd.f32 %v815_v38, %v1860_v24 }
0x10e8   :  { %819 = vrot.lane.b32.xlu1 %v816_v40, %s1771_s3  ;;  %v817_v13 = vmul.f32 %v816_v40, %v763_v15 }
0x10f0   :  { %302 = vrot.lane.b32.xlu1 %v1934_v28, %s1772_s24 }
0x115a   :  { %v820_v41 = vpop.permute.xlu1 %819 }
0x115b   :  { %v822_v44 = vmul.f32 %v820_v41, %v816_v40 }
0x115d   :  { %824 = vrot.lane.b32.xlu2 %v822_v44, %s1772_s24 }
0x1162   :  { %v303_v45 = vpop.permute.xlu1 %302 }
0x1163   :  { %306 = vst.msk [vmem:[#allocation3 + $0x10] sm:$0xff] %vm131_vm4, %v303_v45 }
0x1165   :  { %368 = vrot.lane.b32.xlu2 %v1954_v50, %s1772_s24 }
0x116a   :  { %v639_v28 = vld [vmem:[#allocation3 + $0x10] sm:$0xff] }
0x11b7   :  { %v825_v46 = vpop.permute.xlu2 %824 }
0x11b8   :  { %v827_v47 = vadd.f32 %v825_v46, %v817_v13 }
0x11ba   :  { %1707 = vtanh.f32 %v827_v47 }
0x11bf   :  { %v369_v48 = vpop.permute.xlu2 %368 }
0x11c0   :  { %v1708_v49 = vpop.eup %1707  ;;  %372 = vst.msk [vmem:[#allocation3 + $0x18] sm:$0xff] %vm131_vm4, %v369_v48  ;;  %v1654_v48 = vld [vmem:[%s2317_s5 + $0x8] sm:$0xff] }
0x11c1   :  { %830 = vrot.lane.b32.xlu0 %v1708_v49, %s1771_s3  ;;  %997 = vmatpush.bf16.msrb.mxu2 %v1654_v48  ;;  %v1653_v49 = vld [vmem:[%s2317_s5] sm:$0xff] }
0x11c5   :  { %998 = vmatpush.bf16.msrb.mxu2 %v1653_v49 }
0x11c7   :  { %v640_v51 = vld [vmem:[#allocation3 + $0x18] sm:$0xff] }
0x11c8   :  { %v646_v53 = vpack.c.bf16 %v640_v51, %v639_v28 }
0x11ca   :  { %1540 = vmatmul.msk.bf16.gmra.mxu3 %vm131_vm4, %v646_v53 }
0x1233   :  { %v831_v54 = vpop.permute.xlu0 %830 }
0x1234   :  { %v2083_v9 = vmul.f32 %v831_v54, %v816_v40 }
0x1236   :  { %v840_v50 = vpack.c.bf16 %v2083_v9, %v2083_v9 }
0x1238   :  { %846 = vrot.lane.b32.xlu0 %v840_v50, %s1772_s24 }
0x124d   :  { %v695_v57 = vpop.f32.mrf.mxu3 }
0x124e   :  { %v696_v58 = vadd.f32 %v2026_v52, %v695_v57 }
0x1255   :  { %v697_v25 = vpop.f32.mrf.mxu3 }
0x1256   :  { %v698_v43 = vadd.f32 %v2026_v52, %v697_v25 }
0x12aa   :  { %v847_v56 = vpop.permute.xlu0 %846 }
0x12ab   :  { %1568 = vmatmul.msk.bf16.vlgmr.msrb.gmra.mxu0 %vm131_vm4, %v847_v56 }
0x1328   :  { %v872_v59 = vpop.f32.mrf.mxu0 }
0x1329   :  { %v876_v60 = vadd.f32 %v872_v59, %v696_v58  ;;  %v104_v59 = vadd.f32 %v1854_v14, %v1918_v5  ;;  %v1656_v5 = vld [vmem:[%s2317_s5 + $0x8] sm:$0xff] }
0x132a   :  { %1061 = vmatpush.bf16.msra.mxu0 %v1656_v5 }
0x132b   :  { %v877_v61 = vmul.f32 %v876_v60, %v1857_v18  ;;  %v609_v60 = vadd.f32 %v2067_v29, %v104_v59  ;;  %v1655_v29 = vld [vmem:[%s2317_s5] sm:$0xff] }
0x132d   :  { %1709 = vtanh.f32 %v877_v61  ;;  %v610_v61 = vmul.f32 %v609_v60, %v1857_v18 }
0x132e   :  { %1062 = vmatpush.bf16.msra.mxu0 %v1655_v29 }
0x1330   :  { %v874_v62 = vpop.f32.mrf.mxu0 }
0x1333   :  { %v1710_v63 = vpop.eup %1709 }
0x1334   :  { %v879_v0 = vmul.f32 %v1710_v63, %v1857_v18 }
0x1336   :  { %v880_v42 = vadd.f32 %v879_v0, %v1860_v24 }
0x1338   :  { %883 = vrot.lane.b32.xlu1 %v880_v42, %s1771_s3  ;;  %v881_v7 = vmul.f32 %v880_v42, %v827_v47 }
0x13aa   :  { %v884_v2 = vpop.permute.xlu1 %883 }
0x13ab   :  { %v886_v3 = vmul.f32 %v884_v2, %v880_v42 }
0x13ad   :  { %888 = vrot.lane.b32.xlu2 %v886_v3, %s1772_s24 }
0x1407   :  { %v889_v11 = vpop.permute.xlu2 %888 }
0x1408   :  { %v891_v12 = vadd.f32 %v889_v11, %v881_v7 }
0x140a   :  { %1711 = vtanh.f32 %v891_v12 }
0x1410   :  { %v1712_v15 = vpop.eup %1711 }
0x1411   :  { %894 = vrot.lane.b32.xlu0 %v1712_v15, %s1771_s3 }
0x1483   :  { %v895_v19 = vpop.permute.xlu0 %894 }
0x1484   :  { %v2108_v20 = vmul.f32 %v895_v19, %v880_v42 }
0x1486   :  { %v904_v22 = vpack.c.bf16 %v2108_v20, %v2108_v20 }
0x1488   :  { %910 = vrot.lane.b32.xlu1 %v904_v22, %s1772_s24 }
0x14fa   :  { %v911_v10 = vpop.permute.xlu1 %910 }
0x14fb   :  { %1577 = vmatmul.msk.bf16.vlgmr.msrb.gmra.mxu1 %vm131_vm4, %v911_v10 }
0x1578   :  { %v936_v26 = vpop.f32.mrf.mxu1 }
0x1579   :  { %v940_v27 = vadd.f32 %v936_v26, %v698_v43 }
0x157b   :  { %v941_v39 = vmul.f32 %v940_v27, %v1857_v18 }
0x157d   :  { %1713 = vtanh.f32 %v941_v39 }
0x1580   :  { %v938_v30 = vpop.f32.mrf.mxu1 }
0x1583   :  { %v1714_v31 = vpop.eup %1713 }
0x1584   :  { %v943_v32 = vmul.f32 %v1714_v31, %v1857_v18 }
0x1586   :  { %v944_v1 = vadd.f32 %v943_v32, %v1860_v24 }
0x1588   :  { %947 = vrot.lane.b32.xlu2 %v944_v1, %s1771_s3  ;;  %v945_v37 = vmul.f32 %v944_v1, %v891_v12 }
0x1590   :  { %434 = vrot.lane.b32.xlu2 %v1974_v8, %s1772_s24 }
0x15e2   :  { %v948_v33 = vpop.permute.xlu2 %947 }
0x15e3   :  { %v950_v34 = vmul.f32 %v948_v33, %v944_v1 }
0x15e5   :  { %952 = vrot.lane.b32.xlu0 %v950_v34, %s1772_s24 }
0x15ea   :  { %v435_v35 = vpop.permute.xlu2 %434 }
0x15eb   :  { %438 = vst.msk [vmem:[#allocation3 + $0x20] sm:$0xff] %vm131_vm4, %v435_v35 }
0x15ed   :  { %500 = vrot.lane.b32.xlu0 %v2001_v36, %s1772_s24 }
0x15f2   :  { %v641_v8 = vld [vmem:[#allocation3 + $0x20] sm:$0xff] }
0x1657   :  { %v953_v38 = vpop.permute.xlu0 %952 }
0x1658   :  { %v955_v40 = vadd.f32 %v953_v38, %v945_v37 }
0x165a   :  { %1715 = vtanh.f32 %v955_v40 }
0x165f   :  { %v501_v41 = vpop.permute.xlu0 %500 }
0x1660   :  { %v1716_v44 = vpop.eup %1715  ;;  %504 = vst.msk [vmem:[#allocation3 + $0x28] sm:$0xff] %vm131_vm4, %v501_v41 }
0x1661   :  { %958 = vrot.lane.b32.xlu1 %v1716_v44, %s1771_s3 }
0x1667   :  { %v642_v45 = vld [vmem:[#allocation3 + $0x28] sm:$0xff] }
0x1668   :  { %v647_v13 = vpack.c.bf16 %v642_v45, %v641_v8 }
0x166a   :  { %1541 = vmatmul.msk.bf16.gmra.mxu3 %vm131_vm4, %v647_v13 }
0x16d3   :  { %v959_v46 = vpop.permute.xlu1 %958 }
0x16d4   :  { %v2128_v47 = vmul.f32 %v959_v46, %v944_v1 }
0x16d6   :  { %v968_v36 = vpack.c.bf16 %v2128_v47, %v2128_v47 }
0x16d8   :  { %974 = vrot.lane.b32.xlu1 %v968_v36, %s1772_s24 }
0x16ed   :  { %v700_v51 = vpop.f32.mrf.mxu3 }
0x16ee   :  { %v701_v53 = vadd.f32 %v2026_v52, %v700_v51 }
0x16f5   :  { %v702_v10 = vpop.f32.mrf.mxu3 }
0x16f6   :  { %v703_v25 = vadd.f32 %v2026_v52, %v702_v10 }
0x174a   :  { %v975_v28 = vpop.permute.xlu1 %974 }
0x174b   :  { %1586 = vmatmul.msk.bf16.vlgmr.msrb.gmra.mxu2 %vm131_vm4, %v975_v28 }
0x17ce   :  { %v1000_v54 = vpop.f32.mrf.mxu2 }
0x17cf   :  { %v1004_v50 = vadd.f32 %v1000_v54, %v701_v53  ;;  %v1658_v53 = vld [vmem:[%s2317_s5 + $0x8] sm:$0xff]  ;;  %v1657_v54 = vld [vmem:[%s2317_s5] sm:$0xff] }
0x17d0   :  { %1125 = vmatpush.bf16.msra.mxu1 %v1658_v53 }
0x17d1   :  { %v1005_v55 = vmul.f32 %v1004_v50, %v1857_v18 }
0x17d3   :  { %1717 = vtanh.f32 %v1005_v55 }
0x17d4   :  { %1719 = vtanh.f32 %v610_v61  ;;  %1126 = vmatpush.bf16.msra.mxu1 %v1657_v54 }
0x17d6   :  { %v1002_v4 = vpop.f32.mrf.mxu2 }
0x17d9   :  { %v1718_v56 = vpop.eup %1717 }
0x17da   :  { %v1007_v57 = vmul.f32 %v1718_v56, %v1857_v18  ;;  %v1720_v0 = vpop.eup %1719 }
0x17db   :  { %v612_v42 = vmul.f32 %v1720_v0, %v1857_v18 }
0x17dc   :  { %v1008_v58 = vadd.f32 %v1007_v57, %v1860_v24 }
0x17dd   :  { %v613_v2 = vadd.f32 %v612_v42, %v1860_v24 }
0x17de   :  { %1011 = vrot.lane.b32.xlu2 %v1008_v58, %s1771_s3  ;;  %v1009_v3 = vmul.f32 %v1008_v58, %v955_v40 }
0x17df   :  { %v614_v32 = vmul.f32 %v613_v2, %v2038_v6 }
0x1838   :  { %v1012_v62 = vpop.permute.xlu2 %1011 }
0x1839   :  { %v1014_v63 = vmul.f32 %v1012_v62, %v1008_v58 }
0x183b   :  { %1016 = vrot.lane.b32.xlu0 %v1014_v63, %s1772_s24 }
0x1843   :  { %616 = vrot.lane.b32.xlu0 %v613_v2, %s1771_s3 }
0x18ad   :  { %v1017_v7 = vpop.permute.xlu0 %1016 }
0x18ae   :  { %v1019_v11 = vadd.f32 %v1017_v7, %v1009_v3 }
0x18b0   :  { %1721 = vtanh.f32 %v1019_v11 }
0x18b5   :  { %v617_v17 = vpop.permute.xlu0 %616 }
0x18b6   :  { %v1722_v14 = vpop.eup %1721  ;;  %v619_v19 = vmul.f32 %v617_v17, %v613_v2 }
0x18b7   :  { %1022 = vrot.lane.b32.xlu1 %v1722_v14, %s1771_s3  ;;  %v1659_v14 = vld [vmem:[%s2317_s5] sm:$0xff] }
0x1929   :  { %v1023_v12 = vpop.permute.xlu1 %1022 }
0x192a   :  { %v2160_v15 = vmul.f32 %v1023_v12, %v1008_v58 }
0x192c   :  { %v1032_v16 = vpack.c.bf16 %v2160_v15, %v2160_v15 }
0x192e   :  { %1038 = vrot.lane.b32.xlu2 %v1032_v16, %s1772_s24 }
0x1936   :  { %621 = vrot.lane.b32.xlu2 %v619_v19, %s1772_s24 }
0x1988   :  { %v1039_v22 = vpop.permute.xlu2 %1038 }
0x1989   :  { %1595 = vmatmul.msk.bf16.vlgmr.msra.gmra.mxu0 %vm131_vm4, %v1039_v22 }
0x1990   :  { %v622_v30 = vpop.permute.xlu2 %621 }
0x1991   :  { %v624_v33 = vadd.f32 %v622_v30, %v614_v32 }
0x1a06   :  { %v1064_v43 = vpop.f32.mrf.mxu0 }
0x1a07   :  { %v1068_v26 = vadd.f32 %v1064_v43, %v703_v25 }
0x1a09   :  { %v1069_v27 = vmul.f32 %v1068_v26, %v1857_v18 }
0x1a0b   :  { %1723 = vtanh.f32 %v1069_v27 }
0x1a0c   :  { %1725 = vtanh.f32 %v624_v33 }
0x1a0e   :  { %v1066_v39 = vpop.f32.mrf.mxu0 }
0x1a11   :  { %v1724_v31 = vpop.eup %1723 }
0x1a12   :  { %v1071_v1 = vmul.f32 %v1724_v31, %v1857_v18  ;;  %v1726_v35 = vpop.eup %1725 }
0x1a14   :  { %v1072_v34 = vadd.f32 %v1071_v1, %v1860_v24 }
0x1a16   :  { %1075 = vrot.lane.b32.xlu1 %v1072_v34, %s1771_s3  ;;  %v1073_v6 = vmul.f32 %v1072_v34, %v1019_v11  ;;  %v1660_v11 = vld [vmem:[%s2317_s5 + $0x8] sm:$0xff] }
0x1a17   :  { %1189 = vmatpush.bf16.msra.mxu2 %v1660_v11 }
0x1a1b   :  { %1190 = vmatpush.bf16.msra.mxu2 %v1659_v14 }
0x1a1e   :  { %627 = vrot.lane.b32.xlu1 %v1726_v35, %s1771_s3 }
0x1a88   :  { %v1076_v37 = vpop.permute.xlu1 %1075 }
0x1a89   :  { %v1078_v38 = vmul.f32 %v1076_v37, %v1072_v34 }
0x1a8b   :  { %1080 = vrot.lane.b32.xlu0 %v1078_v38, %s1772_s24 }
0x1a90   :  { %v628_v40 = vpop.permute.xlu1 %627 }
0x1a91   :  { %v630_v41 = vmul.f32 %v628_v40, %v613_v2 }
0x1a93   :  { %566 = vrot.lane.b32.xlu0 %v2049_v21, %s1772_s24  ;;  %632 = vrot.lane.b32.xlu1 %v630_v41, %s1772_s24 }
0x1afd   :  { %v1081_v44 = vpop.permute.xlu0 %1080 }
0x1afe   :  { %v1083_v8 = vadd.f32 %v1081_v44, %v1073_v6 }
0x1b00   :  { %1727 = vtanh.f32 %v1083_v8 }
0x1b05   :  { %v567_v45 = vpop.permute.xlu0 %566  ;;  %v633_v13 = vpop.permute.xlu1 %632 }
0x1b06   :  { %v1728_v46 = vpop.eup %1727  ;;  %570 = vst.msk [vmem:[#allocation3 + $0x30] sm:$0xff] %vm131_vm4, %v567_v45 }
0x1b07   :  { %636 = vst.msk [vmem:[#allocation3 + $0x38] sm:$0xff] %vm131_vm4, %v633_v13  ;;  %1086 = vrot.lane.b32.xlu2 %v1728_v46, %s1771_s3 }
0x1b0d   :  { %v643_v36 = vld [vmem:[#allocation3 + $0x30] sm:$0xff] }
0x1b0e   :  { %v644_v48 = vld [vmem:[#allocation3 + $0x38] sm:$0xff] }
0x1b0f   :  { %v648_v49 = vpack.c.bf16 %v644_v48, %v643_v36 }
0x1b11   :  { %1542 = vmatmul.msk.bf16.gmra.mxu3 %vm131_vm4, %v648_v49 }
0x1b61   :  { %v1087_v21 = vpop.permute.xlu2 %1086 }
0x1b62   :  { %v1089_v28 = vmul.f32 %v1087_v21, %v1072_v34 }
0x1b64   :  { %v1096_v51 = vpack.c.bf16 %v1089_v28, %v1089_v28 }
0x1b66   :  { %1102 = vrot.lane.b32.xlu2 %v1096_v51, %s1772_s24 }
0x1b94   :  { %v705_v55 = vpop.f32.mrf.mxu3 }
0x1b95   :  { %v706_v4 = vadd.f32 %v2026_v52, %v705_v55 }
0x1b9c   :  { %v707_v10 = vpop.f32.mrf.mxu3 }
0x1bc0   :  { %v1103_v50 = vpop.permute.xlu2 %1102 }
0x1bc1   :  { %1604 = vmatmul.msk.bf16.vlgmr.msra.gmra.mxu1 %vm131_vm4, %v1103_v50 }
0x1c3e   :  { %v1128_v56 = vpop.f32.mrf.mxu1 }
0x1c3f   :  { %v1132_v57 = vadd.f32 %v1128_v56, %v706_v4 }
0x1c41   :  { %v1133_v58 = vmul.f32 %v1132_v57, %v1857_v18 }
0x1c43   :  { %1729 = vtanh.f32 %v1133_v58 }
0x1c46   :  { %v1130_v59 = vpop.f32.mrf.mxu1 }
0x1c49   :  { %v1730_v60 = vpop.eup %1729 }
0x1c4a   :  { %v1135_v61 = vmul.f32 %v1730_v60, %v1857_v18 }
0x1c4c   :  { %v1136_v62 = vadd.f32 %v1135_v61, %v1860_v24 }
0x1c4e   :  { %1139 = vrot.lane.b32.xlu0 %v1136_v62, %s1771_s3  ;;  %v1137_v42 = vmul.f32 %v1136_v62, %v1083_v8 }
0x1cc0   :  { %v1140_v63 = vpop.permute.xlu0 %1139 }
0x1cc1   :  { %v1142_v0 = vmul.f32 %v1140_v63, %v1136_v62 }
0x1cc3   :  { %1144 = vrot.lane.b32.xlu1 %v1142_v0, %s1772_s24 }
0x1d35   :  { %v1145_v2 = vpop.permute.xlu1 %1144 }
0x1d36   :  { %v2196_v3 = vadd.f32 %v1145_v2, %v1137_v42 }
0x1d38   :  { %1731 = vtanh.f32 %v2196_v3 }
0x1d3e   :  { %v1732_v7 = vpop.eup %1731 }
0x1d3f   :  { %1150 = vrot.lane.b32.xlu2 %v1732_v7, %s1771_s3 }
0x1d99   :  { %v1151_v5 = vpop.permute.xlu2 %1150 }
0x1d9a   :  { %v1153_v29 = vmul.f32 %v1151_v5, %v1136_v62 }
0x1d9c   :  { %v1160_v12 = vpack.c.bf16 %v1153_v29, %v1153_v29 }
0x1d9e   :  { %1166 = vrot.lane.b32.xlu0 %v1160_v12, %s1772_s24 }
0x1da6   :  { %771 = vrot.lane.b32.xlu0 %v2054_v23, %s1772_s24  ;;  %v708_v23 = vadd.f32 %v2026_v52, %v707_v10  ;;  %v1662_v52 = vld [vmem:[%s2319_s7 + $0x8] sm:$0xff] }
0x1da7   :  { %1417 = vmatpush.bf16.msrb.mxu0 %v1662_v52 }
0x1dae   :  { %899 = vrot.lane.b32.xlu0 %v2108_v20, %s1772_s24 }
0x1db6   :  { %1091 = vrot.lane.b32.xlu0 %v1089_v28, %s1772_s24 }
0x1e10   :  { %v1167_v16 = vpop.permute.xlu0 %1166 }
0x1e11   :  { %1613 = vmatmul.msk.bf16.vlgmr.msra.gmra.mxu2 %vm131_vm4, %v1167_v16 }
0x1e18   :  { %v772_v17 = vpop.permute.xlu0 %771 }
0x1e19   :  { %774 = vst.msk [vmem:[#allocation3] sm:$0xff] %vm131_vm4, %v772_v17 }
0x1e20   :  { %v900_v19 = vpop.permute.xlu0 %899 }
0x1e21   :  { %902 = vst.msk [vmem:[#allocation3 + $0x10] sm:$0xff] %vm131_vm4, %v900_v19 }
0x1e28   :  { %v1092_v22 = vpop.permute.xlu0 %1091  ;;  %v2241_v34 = vld [vmem:[#allocation3 + $0x10] sm:$0xff] }
0x1e29   :  { %1094 = vst.msk [vmem:[#allocation3 + $0x28] sm:$0xff] %vm131_vm4, %v1092_v22  ;;  %v1257_v35 = vand.u32 2147483647, %v2241_v34  ;;  %vm1241_vm12 = vcmp.ne.f32.partialorder %v2241_v34, %v2241_v34 }
0x1e2b   :  { %v1265_v6 = vsub.f32 0.0, %v1257_v35 }
0x1e2d   :  { %v1275_v13 = vmul.f32 1.442695, %v1265_v6 }
0x1e94   :  { %v1192_v25 = vpop.f32.mrf.mxu2 }
0x1e95   :  { %v1196_v43 = vadd.f32 %v1192_v25, %v708_v23 }
0x1e97   :  { %v1197_v20 = vmul.f32 %v1196_v43, %v1857_v18 }
0x1e99   :  { %1733 = vtanh.f32 %v1197_v20 }
0x1e9c   :  { %v1194_v26 = vpop.f32.mrf.mxu2 }
0x1e9f   :  { %v1734_v27 = vpop.eup %1733 }
0x1ea0   :  { %v1199_v39 = vmul.f32 %v1734_v27, %v1857_v18  ;;  %v1661_v18 = vld [vmem:[%s2319_s7] sm:$0xff] }
0x1ea1   :  { %1418 = vmatpush.bf16.msrb.mxu0 %v1661_v18 }
0x1ea2   :  { %v2220_v30 = vadd.f32 %v1199_v39, %v1860_v24  ;;  %v2235_v24 = vld [vmem:[#allocation3] sm:$0xff] }
0x1ea3   :  { %v1255_v31 = vand.u32 2147483647, %v2235_v24  ;;  %v1231_v42 = vmax.f32 %v2235_v24, 0.0  ;;  %vm1239_vm7 = vcmp.ne.f32.partialorder %v2235_v24, %v2235_v24 }
0x1ea4   :  { %1203 = vrot.lane.b32.xlu1 %v2220_v30, %s1771_s3 }
0x1eac   :  { %835 = vrot.lane.b32.xlu1 %v2083_v9, %s1772_s24 }
0x1eb4   :  { %963 = vrot.lane.b32.xlu1 %v2128_v47, %s1772_s24  ;;  %v1263_v47 = vsub.f32 0.0, %v1255_v31 }
0x1eb6   :  { %v1271_v1 = vmul.f32 1.442695, %v1263_v47  ;;  %v1233_v47 = vmax.f32 %v2241_v34, 0.0 }
0x1eb8   :  { %1735 = vpow2.f32 %v1271_v1 }
0x1ebc   :  { %1155 = vrot.lane.b32.xlu1 %v1153_v29, %s1772_s24 }
0x1ebe   :  { %v1736_v40 = vpop.eup %1735 }
0x1ebf   :  { %v1287_v8 = vadd.f32 1.0, %v1736_v40  ;;  %v1290_v49 = vmul.f32 -0.5, %v1736_v40  ;;  %v1293_v56 = vand.u32 2147483647, %v1736_v40 }
0x1ec1   :  { %v1291_v50 = vadd.f32 1.0, %v1290_v49  ;;  %vm1294_vm5 = vcmp.lt.f32.partialorder %v1293_v56, 0.0004427343 }
0x1ec3   :  { %v1292_v58 = vmul.f32 %v1736_v40, %v1291_v50  ;;  %v1201_v40 = vmul.f32 %v2220_v30, %v2196_v3 }
0x1f16   :  { %v1204_v9 = vpop.permute.xlu1 %1203 }
0x1f17   :  { %v1206_v32 = vmul.f32 %v1204_v9, %v2220_v30 }
0x1f19   :  { %1208 = vrot.lane.b32.xlu2 %v1206_v32, %s1772_s24 }
0x1f1e   :  { %v836_v33 = vpop.permute.xlu1 %835 }
0x1f1f   :  { %838 = vst.msk [vmem:[#allocation3 + $0x8] sm:$0xff] %vm131_vm4, %v836_v33 }
0x1f26   :  { %v964_v37 = vpop.permute.xlu1 %963  ;;  %v1224_v38 = vld [vmem:[#allocation3 + $0x8] sm:$0xff] }
0x1f27   :  { %966 = vst.msk [vmem:[#allocation3 + $0x18] sm:$0xff] %vm131_vm4, %v964_v37  ;;  %v1256_v41 = vand.u32 2147483647, %v1224_v38  ;;  %v1232_v14 = vmax.f32 %v1224_v38, 0.0  ;;  %vm1240_vm8 = vcmp.ne.f32.partialorder %v1224_v38, %v1224_v38 }
0x1f29   :  { %v1264_v44 = vsub.f32 0.0, %v1256_v41 }
0x1f2b   :  { %v1273_v45 = vmul.f32 1.442695, %v1264_v44 }
0x1f2d   :  { %1737 = vpow2.f32 %v1273_v45 }
0x1f2e   :  { %v1156_v46 = vpop.permute.xlu1 %1155  ;;  %1739 = vlog2.f32 %v1287_v8  ;;  %v2245_v36 = vld [vmem:[#allocation3 + $0x18] sm:$0xff]  ;;  %v2271_v8 = vld [vmem:[%s2318_s8] ss:$0 sm:$0xff] }
0x1f2f   :  { %1158 = vst.msk [vmem:[#allocation3 + $0x30] sm:$0xff] %vm131_vm4, %v1156_v46  ;;  %v1258_v48 = vand.u32 2147483647, %v2245_v36  ;;  %1741 = vpow2.f32 %v1275_v13  ;;  %v1234_v32 = vmax.f32 %v2245_v36, 0.0  ;;  %vm1242_vm11 = vcmp.ne.f32.partialorder %v2245_v36, %v2245_v36 }
0x1f31   :  { %v1266_v21 = vsub.f32 0.0, %v1258_v48 }
0x1f33   :  { %v1738_v28 = vpop.eup %1737  ;;  %v1277_v51 = vmul.f32 1.442695, %v1266_v21 }
0x1f34   :  { %v1740_v53 = vpop.eup %1739  ;;  %v1296_v54 = vadd.f32 1.0, %v1738_v28  ;;  %v1299_v55 = vmul.f32 -0.5, %v1738_v28  ;;  %v1302_v61 = vand.u32 2147483647, %v1738_v28 }
0x1f35   :  { %1743 = vpow2.f32 %v1277_v51  ;;  %v1742_v4 = vpop.eup %1741  ;;  %v1289_v57 = vmul.f32 0.6931472, %v1740_v53 }
0x1f36   :  { %1745 = vlog2.f32 %v1296_v54  ;;  %v1300_v59 = vadd.f32 1.0, %v1299_v55  ;;  %v1305_v60 = vadd.f32 1.0, %v1742_v4  ;;  %vm1303_vm6 = vcmp.lt.f32.partialorder %v1302_v61, 0.0004427343 }
0x1f37   :  { %v1295_v63 = vsel %vm1294_vm5, %v1292_v58, %v1289_v57  ;;  %v1308_v17 = vmul.f32 -0.5, %v1742_v4  ;;  %v1311_v39 = vand.u32 2147483647, %v1742_v4 }
0x1f38   :  { %v1301_v11 = vmul.f32 %v1738_v28, %v1300_v59  ;;  %1747 = vlog2.f32 %v1305_v60  ;;  %v1359_v5 = vadd.f32 %v1295_v63, %v1231_v42 }
0x1f39   :  { %v1309_v26 = vadd.f32 1.0, %v1308_v17  ;;  %vm1312_vm10 = vcmp.lt.f32.partialorder %v1311_v39, 0.0004427343 }
0x1f3a   :  { %v1367_v19 = vsel %vm1239_vm7, %v2235_v24, %v1359_v5 }
0x1f3b   :  { %v1744_v62 = vpop.eup %1743  ;;  %v1310_v31 = vmul.f32 %v1742_v4, %v1309_v26  ;;  %v1229_v26 = vld [vmem:[#allocation3 + $0x30] sm:$0xff] }
0x1f3c   :  { %v1746_v0 = vpop.eup %1745  ;;  %v1314_v2 = vadd.f32 1.0, %v1744_v62  ;;  %v1317_v12 = vmul.f32 -0.5, %v1744_v62  ;;  %v1320_v20 = vand.u32 2147483647, %v1744_v62  ;;  %vm1245_vm3 = vcmp.ne.f32.partialorder %v1229_v26, %v1229_v26 }
0x1f3d   :  { %v1298_v7 = vmul.f32 0.6931472, %v1746_v0 }
0x1f3e   :  { %1749 = vlog2.f32 %v1314_v2  ;;  %v1748_v10 = vpop.eup %1747  ;;  %v1318_v25 = vadd.f32 1.0, %v1317_v12  ;;  %vm1321_vm9 = vcmp.lt.f32.partialorder %v1320_v20, 0.0004427343 }
0x1f3f   :  { %v1304_v29 = vsel %vm1303_vm6, %v1301_v11, %v1298_v7  ;;  %v1307_v52 = vmul.f32 0.6931472, %v1748_v10 }
0x1f40   :  { %v1360_v16 = vadd.f32 %v1304_v29, %v1232_v14  ;;  %v1319_v18 = vmul.f32 %v1744_v62, %v1318_v25 }
0x1f41   :  { %v1313_v24 = vsel %vm1312_vm10, %v1310_v31, %v1307_v52 }
0x1f42   :  { %v1368_v22 = vsel %vm1240_vm8, %v1224_v38, %v1360_v16  ;;  %v1361_v33 = vadd.f32 %v1313_v24, %v1233_v47 }
0x1f43   :  { %v1375_v23 = vpack.c.bf16 %v1368_v22, %v1367_v19 }
0x1f44   :  { %v1750_v43 = vpop.eup %1749  ;;  %v1369_v37 = vsel %vm1241_vm12, %v2241_v34, %v1361_v33 }
0x1f45   :  { %1622 = vmatmul.msk.bf16.vlgmr.msrb.gmra.mxu0 %vm131_vm4, %v1375_v23  ;;  %v1316_v27 = vmul.f32 0.6931472, %v1750_v43 }
0x1f47   :  { %v1322_v9 = vsel %vm1321_vm9, %v1319_v18, %v1316_v27  ;;  %v1261_v27 = vand.u32 2147483647, %v1229_v26 }
0x1f48   :  { %v1362_v1 = vadd.f32 %v1322_v9, %v1234_v32 }
0x1f49   :  { %v1269_v39 = vsub.f32 0.0, %v1261_v27 }
0x1f4a   :  { %v1370_v35 = vsel %vm1242_vm11, %v2245_v36, %v1362_v1  ;;  %v1228_v36 = vld [vmem:[#allocation3 + $0x28] sm:$0xff] }
0x1f4b   :  { %v1376_v38 = vpack.c.bf16 %v1370_v35, %v1369_v37  ;;  %v1260_v48 = vand.u32 2147483647, %v1228_v36  ;;  %v1236_v12 = vmax.f32 %v1228_v36, 0.0  ;;  %vm1244_vm0 = vcmp.ne.f32.partialorder %v1228_v36, %v1228_v36 }
0x1f4c   :  { %v1283_v52 = vmul.f32 1.442695, %v1269_v39 }
0x1f4d   :  { %v1268_v51 = vsub.f32 0.0, %v1260_v48 }
0x1f4f   :  { %v1281_v54 = vmul.f32 1.442695, %v1268_v51 }
0x1f55   :  { %1623 = vmatmul.msk.bf16.gmra.mxu0 %vm131_vm4, %v1376_v38 }
0x1f73   :  { %v1209_v41 = vpop.permute.xlu2 %1208 }
0x1f74   :  { %v1211_v6 = vadd.f32 %v1209_v41, %v1201_v40 }
0x1f76   :  { %1751 = vtanh.f32 %v1211_v6 }
0x1f77   :  { %1753 = vpow2.f32 %v1281_v54 }
0x1f7c   :  { %v1752_v44 = vpop.eup %1751 }
0x1f7d   :  { %1214 = vrot.lane.b32.xlu2 %v1752_v44, %s1771_s3  ;;  %v1754_v4 = vpop.eup %1753 }
0x1f7e   :  { %v1335_v59 = vmul.f32 -0.5, %v1754_v4  ;;  %v1338_v42 = vand.u32 2147483647, %v1754_v4 }
0x1f80   :  { %v1336_v0 = vadd.f32 1.0, %v1335_v59  ;;  %vm1339_vm13 = vcmp.lt.f32.partialorder %v1338_v42, 0.0004427343 }
0x1f82   :  { %v1337_v11 = vmul.f32 %v1754_v4, %v1336_v0 }
0x1f85   :  { %1027 = vrot.lane.b32.xlu2 %v2160_v15, %s1772_s24 }
0x1fc2   :  { %v1420_v34 = vpop.f32.mrf.mxu0 }
0x1fc3   :  { %v1421_v45 = vadd.f32 %v2271_v8, %v1420_v34 }
0x1fc5   :  { %1440 = vst [vmem:[%s2320_s9] sm:$0xff] %v1421_v45 }
0x1fca   :  { %v1422_v3 = vpop.f32.mrf.mxu0 }
0x1fcb   :  { %v1423_v13 = vadd.f32 %v2271_v8, %v1422_v3 }
0x1fcd   :  { %1441 = vst [vmem:[%s2320_s9 + $0x8] sm:$0xff] %v1423_v13 }
0x1fd2   :  { %v1425_v15 = vpop.f32.mrf.mxu0 }
0x1fd3   :  { %v1426_v46 = vadd.f32 %v2271_v8, %v1425_v15 }
0x1fd5   :  { %1442 = vst [vmem:[%s2320_s9 + $0x10] sm:$0xff] %v1426_v46  ;;  %v1237_v46 = vmax.f32 %v1229_v26, 0.0 }
0x1fd7   :  { %v1215_v49 = vpop.permute.xlu2 %1214 }
0x1fd8   :  { %v1217_v21 = vmul.f32 %v1215_v49, %v2220_v30  ;;  %v1332_v30 = vadd.f32 1.0, %v1754_v4 }
0x1fda   :  { %v1427_v28 = vpop.f32.mrf.mxu0  ;;  %1219 = vrot.lane.b32.xlu2 %v1217_v21, %s1772_s24 }
0x1fdb   :  { %v1428_v53 = vadd.f32 %v2271_v8, %v1427_v28 }
0x1fdd   :  { %1443 = vst [vmem:[%s2320_s9 + $0x18] sm:$0xff] %v1428_v53 }
0x1fdf   :  { %v1028_v50 = vpop.permute.xlu2 %1027 }
0x1fe0   :  { %1030 = vst.msk [vmem:[#allocation3 + $0x20] sm:$0xff] %vm131_vm4, %v1028_v50 }
0x1fe7   :  { %v1227_v55 = vld [vmem:[#allocation3 + $0x20] sm:$0xff] }
0x1fe8   :  { %v1259_v56 = vand.u32 2147483647, %v1227_v55  ;;  %v1235_v19 = vmax.f32 %v1227_v55, 0.0  ;;  %vm1243_vm15 = vcmp.ne.f32.partialorder %v1227_v55, %v1227_v55 }
0x1fea   :  { %v1267_v57 = vsub.f32 0.0, %v1259_v56 }
0x1fec   :  { %v1279_v58 = vmul.f32 1.442695, %v1267_v57 }
0x1fee   :  { %1755 = vpow2.f32 %v1279_v58 }
0x1fef   :  { %1757 = vlog2.f32 %v1332_v30 }
0x1ff4   :  { %v1756_v60 = vpop.eup %1755 }
0x1ff5   :  { %v1758_v61 = vpop.eup %1757  ;;  %v1323_v62 = vadd.f32 1.0, %v1756_v60  ;;  %v1326_v63 = vmul.f32 -0.5, %v1756_v60  ;;  %v1329_v14 = vand.u32 2147483647, %v1756_v60 }
0x1ff6   :  { %v1334_v2 = vmul.f32 0.6931472, %v1758_v61 }
0x1ff7   :  { %1759 = vlog2.f32 %v1323_v62  ;;  %v1327_v7 = vadd.f32 1.0, %v1326_v63  ;;  %vm1330_vm14 = vcmp.lt.f32.partialorder %v1329_v14, 0.0004427343 }
0x1ff8   :  { %v1340_v5 = vsel %vm1339_vm13, %v1337_v11, %v1334_v2  ;;  %1761 = vpow2.f32 %v1283_v52 }
0x1ff9   :  { %v1328_v17 = vmul.f32 %v1756_v60, %v1327_v7  ;;  %v1364_v22 = vadd.f32 %v1340_v5, %v1236_v12 }
0x1ffb   :  { %v1372_v43 = vsel %vm1244_vm0, %v1228_v36, %v1364_v22 }
0x1ffd   :  { %v1760_v29 = vpop.eup %1759 }
0x1ffe   :  { %v1325_v16 = vmul.f32 0.6931472, %v1760_v29  ;;  %v1762_v9 = vpop.eup %1761 }
0x1fff   :  { %v1341_v47 = vadd.f32 1.0, %v1762_v9  ;;  %v1344_v33 = vmul.f32 -0.5, %v1762_v9  ;;  %v1347_v6 = vand.u32 2147483647, %v1762_v9 }
0x2000   :  { %v1331_v10 = vsel %vm1330_vm14, %v1328_v17, %v1325_v16 }
0x2001   :  { %v1363_v23 = vadd.f32 %v1331_v10, %v1235_v19  ;;  %v1345_v40 = vadd.f32 1.0, %v1344_v33  ;;  %vm1348_vm1 = vcmp.lt.f32.partialorder %v1347_v6, 0.0004427343 }
0x2003   :  { %v1371_v25 = vsel %vm1243_vm15, %v1227_v55, %v1363_v23  ;;  %v1346_v34 = vmul.f32 %v1762_v9, %v1345_v40 }
0x2004   :  { %v1377_v20 = vpack.c.bf16 %v1372_v43, %v1371_v25 }
0x2006   :  { %1624 = vmatmul.msk.bf16.gmra.mxu0 %vm131_vm4, %v1377_v20 }
0x2034   :  { %v1220_v18 = vpop.permute.xlu2 %1219 }
0x2035   :  { %1222 = vst.msk [vmem:[#allocation3 + $0x38] sm:$0xff] %vm131_vm4, %v1220_v18 }
0x203c   :  { %v1230_v31 = vld [vmem:[#allocation3 + $0x38] sm:$0xff] }
0x203d   :  { %v1262_v32 = vand.u32 2147483647, %v1230_v31  ;;  %v1238_v49 = vmax.f32 %v1230_v31, 0.0  ;;  %vm1246_vm5 = vcmp.ne.f32.partialorder %v1230_v31, %v1230_v31 }
0x203f   :  { %v1270_v24 = vsub.f32 0.0, %v1262_v32 }
0x2041   :  { %v1285_v1 = vmul.f32 1.442695, %v1270_v24 }
0x2043   :  { %1763 = vpow2.f32 %v1285_v1 }
0x2044   :  { %1765 = vlog2.f32 %v1341_v47 }
0x2049   :  { %v1764_v35 = vpop.eup %1763 }
0x204a   :  { %v1766_v37 = vpop.eup %1765  ;;  %v1350_v38 = vadd.f32 1.0, %v1764_v35  ;;  %v1353_v41 = vmul.f32 -0.5, %v1764_v35  ;;  %v1356_v3 = vand.u32 2147483647, %v1764_v35 }
0x204b   :  { %v1343_v44 = vmul.f32 0.6931472, %v1766_v37 }
0x204c   :  { %1767 = vlog2.f32 %v1350_v38  ;;  %v1354_v45 = vadd.f32 1.0, %v1353_v41  ;;  %vm1357_vm2 = vcmp.lt.f32.partialorder %v1356_v3, 0.0004427343 }
0x204d   :  { %v1349_v13 = vsel %vm1348_vm1, %v1346_v34, %v1343_v44 }
0x204e   :  { %v1355_v48 = vmul.f32 %v1764_v35, %v1354_v45  ;;  %v1365_v21 = vadd.f32 %v1349_v13, %v1237_v46 }
0x2050   :  { %v1373_v53 = vsel %vm1245_vm3, %v1229_v26, %v1365_v21 }
0x2052   :  { %v1768_v15 = vpop.eup %1767 }
0x2053   :  { %v1352_v36 = vmul.f32 0.6931472, %v1768_v15 }
0x2055   :  { %v1358_v28 = vsel %vm1357_vm2, %v1355_v48, %v1352_v36 }
0x2056   :  { %v1366_v51 = vadd.f32 %v1358_v28, %v1238_v49 }
0x2058   :  { %v1374_v54 = vsel %vm1246_vm5, %v1230_v31, %v1366_v51 }
0x2059   :  { %v1378_v50 = vpack.c.bf16 %v1374_v54, %v1373_v53 }
0x205b   :  { %1625 = vmatmul.msk.bf16.gmra.mxu0 %vm131_vm4, %v1378_v50 }
0x2083   :  { %v1430_v55 = vpop.f32.mrf.mxu0 }
0x2084   :  { %v1431_v4 = vadd.f32 %v2271_v8, %v1430_v55 }
0x2086   :  { %1444 = vst [vmem:[%s2320_s9 + $0x20] sm:$0xff] %v1431_v4 }
0x208b   :  { %v1432_v56 = vpop.f32.mrf.mxu0 }
0x208c   :  { %v1433_v57 = vadd.f32 %v2271_v8, %v1432_v56 }
0x208e   :  { %1445 = vst [vmem:[%s2320_s9 + $0x28] sm:$0xff] %v1433_v57 }
0x20d8   :  { %v1435_v30 = vpop.f32.mrf.mxu0 }
0x20d9   :  { %v1436_v58 = vadd.f32 %v2271_v8, %v1435_v30 }
0x20db   :  { %1446 = vst [vmem:[%s2320_s9 + $0x30] sm:$0xff] %v1436_v58 }
0x20e0   :  { %v1437_v59 = vpop.f32.mrf.mxu0 }
0x20e1   :  { %v1438_v60 = vadd.f32 %v2271_v8, %v1437_v59 }
0x20e3   :  { %1447 = vst [vmem:[%s2320_s9 + $0x38] sm:$0xff] %v1438_v60 }

</bundles_post_ra>
